<compile_context>
chip_gen: v7x
topology: tpu7x:2x2x1
jax: 0.10.0
libtpu: 0.0.40
codegen_flags: <defaults>
</compile_context>

<pallas_src>
import functools

import numpy as np
import jax
import jax.numpy as jnp
from jax.experimental import pallas as pl
from jax.experimental.pallas import tpu as pltpu


# ----------------------------------------------------------------------------
# Pallas kernel: one grid step == BW windows.
# ----------------------------------------------------------------------------
def _swa_kernel(x_ref, wqkv_ref, bias_ref, wproj_ref, bproj_ref, o_ref, stage_ref,
                *, num_heads, bw, n, c_real, scale, approx_recip, group_mode, nwg):
    # x_ref    : (BW, Np, Cp)     padded tokens of BW windows (compute dtype)
    # wqkv_ref : (Cp, 3*Cp)       fused [Wq|Wk|Wv]^T, zero-padded, scale folded into Wq (perf path)
    # bias_ref : (H, G, Np, Np)   rel-pos bias (+ window mask), f32, padded keys = -1e9
    # wproj_ref: (Cp, Cp)         output projection^T, zero-padded
    # bproj_ref: (1, Cp)          output projection bias (f32), zero-padded
    # o_ref    : (BW, Np, Cp)
    # stage_ref: (BW*Np, Cp)      VMEM scratch: head-contiguous attention output
    Cp = wproj_ref.shape[0]
    hd = c_real // num_heads
    cdt = wqkv_ref.dtype                       # matmul input dtype (bf16 perf / f32 check)
    M = bw * n

    x2 = x_ref[...].reshape(M, Cp)             # leading-dim reshape: free

    # Fused QKV projection: one (M, Cp) x (Cp, 3Cp) MXU matmul, f32 accumulation.
    qkv = jnp.dot(x2, wqkv_ref[...], preferred_element_type=jnp.float32)
    q = qkv[:, 0 * Cp:1 * Cp]                  # lane-aligned slices (Cp % 128 == 0)
    k = qkv[:, 1 * Cp:2 * Cp]
    v = qkv[:, 2 * Cp:3 * Cp]
    if scale is not None:                      # f32 verification path only
        q = q * scale

    # Cast once to the compute dtype so the attention einsums feed the MXU bf16.
    qc = q.astype(cdt).reshape(bw, n, Cp)
    kc = k.astype(cdt).reshape(bw, n, Cp)
    vc = v.astype(cdt).reshape(bw, n, Cp)

    # Zero the padded tail columns of the staging buffer once per step
    # (uninitialized VMEM could hold NaN bit patterns; NaN * 0 = NaN).
    if Cp > c_real:
        stage_ref[:, c_real:] = jnp.zeros((M, Cp - c_real), dtype=cdt)

    # TODO(synk): lax.fori_loop(unroll=2..4) here for large num_heads.
    for h in range(num_heads):
        sl = slice(h * hd, (h + 1) * hd)
        qh = qc[:, :, sl]                      # (BW, Np, hd) compute dtype
        kh = kc[:, :, sl]
        vh = vc[:, :, sl]

        # batched over windows: (BW,Np,hd) x (BW,Np,hd) -> (BW,Np,Np), f32 acc.
        logits = jnp.einsum("bqd,bkd->bqk", qh, kh,
                            preferred_element_type=jnp.float32)

        bias_h = bias_ref[h]                   # (G, Np, Np) f32, pre-combined bias(+mask)
        if group_mode and nwg > 1:
            # block covers whole groups of nwg window-types
            logits = (logits.reshape(bw // nwg, nwg, n, n)
                      + bias_h[None]).reshape(bw, n, n)
        else:
            logits = logits + bias_h           # G == 1 (broadcast) or G == BW (direct)

        # softmax over the key axis, f32; EUP reciprocal on the perf path.
        logits = logits - jnp.max(logits, axis=-1, keepdims=True)
        p = jnp.exp(logits)
        p = p * pl.reciprocal(jnp.sum(p, axis=-1, keepdims=True),
                              approx=approx_recip)

        oh = jnp.einsum("bqk,bkd->bqd", p.astype(cdt), vh,
                        preferred_element_type=jnp.float32)       # (BW, Np, hd)
        # Stage this head's output in its column slot (VMEM store).
        stage_ref[:, sl] = oh.reshape(M, hd).astype(cdt)

    # Single output projection with K = Cp, then bias.
    y = jnp.dot(stage_ref[...], wproj_ref[...], preferred_element_type=jnp.float32)
    y = y + bproj_ref[...]
    o_ref[...] = y.reshape(bw, n, Cp).astype(o_ref.dtype)


# ----------------------------------------------------------------------------
# Wrapper
# ----------------------------------------------------------------------------
_VMEM_BUDGET_BYTES = 40 * 1024 * 1024      # conservative: fits v7x (64 MiB VMEM)


def _round_up(v, m):
    return (v + m - 1) // m * m


def _choose_bw(B_, N, nW=None, target_rows=2048, est=None, budget=None):
    """Largest divisor of B_ with BW*N <= target_rows, compatible with nW tiling,
    preferring >=2 grid blocks (TensorCore sharding) and fitting the VMEM budget."""
    divs = [d for d in range(1, B_ + 1) if B_ % d == 0]
    if nW is not None:
        divs = [d for d in divs if (d % nW == 0) or (nW % d == 0)]
    small = [d for d in divs if d <= B_ // 2]          # keep >= 2 grid blocks if possible
    cands = small if small else divs
    target = max(1, target_rows // max(1, N))
    le = [d for d in cands if d <= target]
    bw = max(le) if le else min(cands)
    if est is not None and budget is not None:
        while est(bw) > budget:
            smaller = [d for d in cands if d < bw]
            if not smaller:
                break
            bw = max(smaller)
    return bw


def shared_window_attention(x, qkv_weight, rel_pos_bias, proj_weight, proj_bias,
                            *, scale, num_heads, mask=None,
                            compute_dtype=jnp.bfloat16, window_batch=None,
                            out_dtype=None):
    """x: (B_, N, C).  rel_pos_bias: (H, N, N).  mask: (nW, N, N) additive or None."""
    B_, N, C = x.shape
    H = num_heads
    assert C % H == 0
    nW = None if mask is None else mask.shape[0]
    out_dtype = x.dtype if out_dtype is None else out_dtype

    Np = _round_up(N, 8)          # sublane-aligned sequence
    Cp = _round_up(C, 128)        # lane-dense channels (unmasked output stores)
    G0 = 1 if mask is None else nW
    NEG = jnp.float32(-1e9)

    cbytes = np.dtype(compute_dtype).itemsize
    obytes = np.dtype(out_dtype).itemsize

    def est(bw):                  # rough per-step VMEM footprint (bytes)
        M = bw * Np
        g_blk = G0 if (nW is None or bw % nW == 0) else bw
        xb = 2 * M * Cp * cbytes                              # double-buffered input
        ob = 2 * M * Cp * obytes                              # double-buffered output
        w = 2 * ((Cp * 3 * Cp + Cp * Cp + Cp) * cbytes)       # weights (assume 2x)
        bi = 2 * (H * g_blk * Np * Np * 4)                    # bias(+mask)
        st = M * Cp * cbytes                                  # staging scratch
        im = M * 3 * Cp * 4 + 3 * M * Cp * cbytes + 3 * bw * Np * Np * 4 + 2 * M * Cp * 4
        return xb + ob + w + bi + st + im

    if window_batch is not None:
        BW = window_batch
        assert B_ % BW == 0, "window_batch must divide B_"
        if nW is not None:
            assert (BW % nW == 0) or (nW % BW == 0), "window_batch must tile nW"
    else:
        BW = _choose_bw(B_, N, nW, est=est, budget=_VMEM_BUDGET_BYTES)
    num_blocks = B_ // BW

    fold_scale = np.dtype(compute_dtype) != np.dtype(jnp.float32)

    # ---- weights: pre-transposed, fused QKV, zero-padded to Cp ----
    qkv_f32 = jnp.asarray(qkv_weight, jnp.float32)            # (3C, C)
    wq_t = qkv_f32[0 * C:1 * C, :].T                          # (C, C)
    wk_t = qkv_f32[1 * C:2 * C, :].T
    wv_t = qkv_f32[2 * C:3 * C, :].T
    if fold_scale:
        wq_t = wq_t * jnp.float32(scale)
    pad_cc = lambda w: jnp.pad(w, ((0, Cp - C), (0, Cp - C)))
    wqkv = jnp.concatenate([pad_cc(wq_t), pad_cc(wk_t), pad_cc(wv_t)],
                           axis=1).astype(compute_dtype)      # (Cp, 3Cp)
    wproj = pad_cc(jnp.asarray(proj_weight, jnp.float32).T).astype(compute_dtype)
    bproj = jnp.pad(jnp.asarray(proj_bias, jnp.float32).reshape(1, C),
                    ((0, 0), (0, Cp - C)))                    # (1, Cp) f32

    # ---- rel-pos bias (+ window mask) combined per window type, padded ----
    bias = jnp.asarray(rel_pos_bias, jnp.float32)[:, None, :, :]     # (H, 1, N, N)
    if mask is not None:
        bias = bias + jnp.asarray(mask, jnp.float32)[None, :, :, :]  # (H, nW, N, N)
    bias = jnp.pad(bias, ((0, 0), (0, 0), (0, Np - N), (0, Np - N)))
    if Np > N:
        bias = bias.at[:, :, :, N:].set(NEG)   # padded keys masked; padded queries dropped

    # ---- input padding (zeros in padded rows/channels) ----
    x_p = jnp.pad(x, ((0, 0), (0, Np - N), (0, Cp - C))).astype(compute_dtype)

    group_mode = (mask is None) or (BW % nW == 0)
    if group_mode:
        nwg = G0
        bias_spec = pl.BlockSpec((H, G0, Np, Np), lambda b: (0, 0, 0, 0))
    else:
        nwg = 0
        nblk = nW // BW
        bias_spec = pl.BlockSpec((H, BW, Np, Np),
                                 lambda b, nblk=nblk: (0, b % nblk, 0, 0))

    kernel = functools.partial(
        _swa_kernel, num_heads=H, bw=BW, n=Np, c_real=C,
        scale=None if fold_scale else float(scale),
        approx_recip=fold_scale, group_mode=group_mode, nwg=nwg)

    out_p = pl.pallas_call(
        kernel,
        out_shape=jax.ShapeDtypeStruct((B_, Np, Cp), out_dtype),
        grid=(num_blocks,),
        in_specs=[
            pl.BlockSpec((BW, Np, Cp), lambda b: (b, 0, 0)),
            pl.BlockSpec((Cp, 3 * Cp), lambda b: (0, 0)),
            bias_spec,
            pl.BlockSpec((Cp, Cp), lambda b: (0, 0)),
            pl.BlockSpec((1, Cp), lambda b: (0, 0)),
        ],
        out_specs=pl.BlockSpec((BW, Np, Cp), lambda b: (b, 0, 0)),
        scratch_shapes=[pltpu.VMEM((BW * Np, Cp), compute_dtype)],
        compiler_params=pltpu.CompilerParams(
            dimension_semantics=("parallel",),
            vmem_limit_bytes=48 * 1024 * 1024),
    )(x_p, wqkv, bias, wproj, bproj)

    return out_p[:, :N, :C]


# ----------------------------------------------------------------------------
# Parameter setup (mirrors SharedWindowAttention.__init__, width_ratio=1,
# expand_method='weight_assignment').
# ----------------------------------------------------------------------------
def expand_qkv_weight_assignment(qkv_w, num_heads, shared_head_index, width_ratio=1):
    out_dim, in_dim = qkv_w.shape
    shared = np.asarray(qkv_w).reshape(num_heads, out_dim // num_heads, in_dim)
    shared = shared[np.asarray(shared_head_index)]
    new_heads = int(num_heads // width_ratio)
    rows = []
    idx = 0
    for i in range(new_heads):
        if i % len(shared_head_index) == 0:
            idx = i % shared.shape[0]
        rows.append(shared[idx])
        idx = (idx + 1) % shared.shape[0]
    return jnp.asarray(np.stack(rows).reshape(int(out_dim // width_ratio), in_dim))


def compute_relative_position_index(window_size):
    Wh, Ww = window_size
    coords = np.stack(np.meshgrid(np.arange(Wh), np.arange(Ww), indexing="ij"))
    coords_flat = coords.reshape(2, -1)
    rel = coords_flat[:, :, None] - coords_flat[:, None, :]
    rel = rel.transpose(1, 2, 0).astype(np.int64)
    rel[:, :, 0] += Wh - 1
    rel[:, :, 1] += Ww - 1
    rel[:, :, 0] *= 2 * Ww - 1
    return rel.sum(-1)


def gather_relative_position_bias(table, rel_index, window_size, num_heads):
    N = window_size[0] * window_size[1]
    bias = jnp.asarray(table)[rel_index.reshape(-1)].reshape(N, N, num_heads)
    return jnp.transpose(bias, (2, 0, 1)).astype(jnp.float32)


# ----------------------------------------------------------------------------
# Pure-JAX reference of the PyTorch forward (mask and no-mask paths).
# ----------------------------------------------------------------------------
def reference_forward(x, qkv_weight, rel_pos_bias, proj_weight, proj_bias,
                      *, scale, num_heads, mask=None):
    B_, N, C = x.shape
    hd = C // num_heads
    qkv = jnp.matmul(x, qkv_weight.T)
    qkv = qkv.reshape(B_, N, 3, num_heads, hd).transpose(2, 0, 3, 1, 4)
    q, k, v = qkv[0] * scale, qkv[1], qkv[2]
    attn = jnp.einsum("bhqd,bhkd->bhqk", q, k) + rel_pos_bias[None]
    if mask is not None:
        nW = mask.shape[0]
        attn = attn.reshape(B_ // nW, nW, num_heads, N, N) + mask[None, :, None]
        attn = attn.reshape(B_, num_heads, N, N)
    attn = jax.nn.softmax(attn, axis=-1)
    out = jnp.einsum("bhqk,bhkd->bhqd", attn, v)
    out = out.transpose(0, 2, 1, 3).reshape(B_, N, C)
    return jnp.matmul(out, proj_weight.T) + proj_bias


# ----------------------------------------------------------------------------
def run_case(dim, window_size, num_heads, B, nW, seed=0):
    shared_head_index = [0, 1, 2]
    width_ratio = 1
    B_ = B * nW
    N = window_size[0] * window_size[1]
    head_dim = dim // num_heads
    scale = head_dim ** (-0.5)

    key = jax.random.PRNGKey(seed)
    k_x, k_qkv, k_tab, k_pw, k_pb, k_m = jax.random.split(key, 6)

    pretrained_qkv_w = jax.random.normal(k_qkv, (3 * dim, dim), jnp.float32) * 0.02
    pretrained_proj_w = jax.random.normal(k_pw, (dim, dim), jnp.float32) * 0.02
    pretrained_proj_b = jax.random.normal(k_pb, (dim,), jnp.float32) * 0.02

    qkv_weight = expand_qkv_weight_assignment(
        pretrained_qkv_w, num_heads, shared_head_index, width_ratio)
    proj_weight = pretrained_proj_w       # PruneProj with width_ratio=1
    proj_bias = pretrained_proj_b

    rpb_table = jax.random.normal(
        k_tab, ((2 * window_size[0] - 1) * (2 * window_size[1] - 1), num_heads),
        jnp.float32) * 0.02
    rel_index = compute_relative_position_index(window_size)
    rel_pos_bias = gather_relative_position_bias(rpb_table, rel_index,
                                                 window_size, num_heads)

    x = jax.random.normal(k_x, (B_, N, dim), jnp.float32)
    # Swin-style additive attention mask (0 / -100) for the shifted-window case
    mask = jnp.where(jax.random.uniform(k_m, (nW, N, N)) > 0.35, 0.0, -100.0)

    run = functools.partial(shared_window_attention,
                            x, qkv_weight, rel_pos_bias, proj_weight, proj_bias,
                            scale=scale, num_heads=num_heads)

    ref_nomask = reference_forward(x, qkv_weight, rel_pos_bias, proj_weight,
                                   proj_bias, scale=scale, num_heads=num_heads)
    ref_mask = reference_forward(x, qkv_weight, rel_pos_bias, proj_weight,
                                 proj_bias, scale=scale, num_heads=num_heads,
                                 mask=mask)

    # --- exact-semantics checks (f32 compute path), incl. mask path & grid>1 ---
    for bw in (None, 2):
        o = jax.block_until_ready(run(mask=None, compute_dtype=jnp.float32,
                                      window_batch=bw))
        np.testing.assert_allclose(np.asarray(o), np.asarray(ref_nomask),
                                   rtol=1e-4, atol=1e-4)
        o = jax.block_until_ready(run(mask=mask, compute_dtype=jnp.float32,
                                      window_batch=bw))
        np.testing.assert_allclose(np.asarray(o), np.asarray(ref_mask),
                                   rtol=1e-4, atol=1e-4)

    # --- default bf16 perf path (bf16 MXU inputs, f32 accumulation/softmax) ---
    out = jax.block_until_ready(run(mask=mask))
    assert out.shape == (B_, N, dim)
    np.testing.assert_allclose(np.asarray(out), np.asarray(ref_mask),
                               rtol=5e-2, atol=1e-2)
    out2 = jax.block_until_ready(run(mask=None))
    np.testing.assert_allclose(np.asarray(out2), np.asarray(ref_nomask),
                               rtol=5e-2, atol=1e-2)


if __name__ == "__main__":
    # N = 16 (already sublane-aligned), C = 32 padded to 128
    run_case(dim=32, window_size=(4, 4), num_heads=4, B=2, nW=4)
    # N = 9 -> padded to 16 (exercises key masking on padded positions)
    run_case(dim=32, window_size=(3, 3), num_heads=4, B=2, nW=4)
    print("KERNEL_OK")
</pallas_src>

<mosaic_0001>
module attributes {stable_mosaic.version = 11 : i64} {
  func.func @_swa_kernel(%arg0: i32, %arg1: memref<4x16x128xf32, #tpu.memory_space<vmem>>, %arg2: memref<128x384xf32, #tpu.memory_space<vmem>>, %arg3: memref<4x1x16x16xf32, #tpu.memory_space<vmem>>, %arg4: memref<128x128xf32, #tpu.memory_space<vmem>>, %arg5: memref<1x128xf32, #tpu.memory_space<vmem>>, %arg6: memref<4x16x128xf32, #tpu.memory_space<vmem>>, %arg7: memref<64x128xf32, #tpu.memory_space<vmem>>) attributes {dimension_semantics = [#tpu.dimension_semantics<parallel>], iteration_bounds = array<i64: 2>, scalar_prefetch = 0 : i64, scratch_operands = 1 : i64, tpu.core_type = #tpu.core_type<tc>, window_params = [{transform_indices = @transform_0, window_bounds = array<i64: 4, 16, 128>}, {pipeline_mode = #tpu.pipeline_mode<synchronous>, transform_indices = @transform_1, window_bounds = array<i64: 128, 384>}, {pipeline_mode = #tpu.pipeline_mode<synchronous>, transform_indices = @transform_2, window_bounds = array<i64: 4, 1, 16, 16>}, {pipeline_mode = #tpu.pipeline_mode<synchronous>, transform_indices = @transform_3, window_bounds = array<i64: 128, 128>}, {pipeline_mode = #tpu.pipeline_mode<synchronous>, transform_indices = @transform_4, window_bounds = array<i64: 1, 128>}, {transform_indices = @transform_5, window_bounds = array<i64: 4, 16, 128>}]} {
    %c0 = arith.constant 0 : index
    %c0_0 = arith.constant 0 : index
    %c0_1 = arith.constant 0 : index
    %0 = vector.load %arg1[%c0, %c0_0, %c0_1] : memref<4x16x128xf32, #tpu.memory_space<vmem>>, vector<4x16x128xf32>
    %1 = vector.shape_cast %0 : vector<4x16x128xf32> to vector<64x128xf32>
    %c0_2 = arith.constant 0 : index
    %c0_3 = arith.constant 0 : index
    %2 = vector.load %arg2[%c0_2, %c0_3] : memref<128x384xf32, #tpu.memory_space<vmem>>, vector<128x384xf32>
    %cst = arith.constant dense<0.000000e+00> : vector<64x384xf32>
    %3 = tpu.matmul %1, %2, %cst {dimension_numbers = #tpu.dot_dimension_numbers<[1], [0], [0], [1], [0, 0, 1, 1], [], []>} : vector<64x128xf32>, vector<128x384xf32>, vector<64x384xf32> -> vector<64x384xf32>
    %4 = vector.extract_strided_slice %3 {offsets = [0, 0], sizes = [64, 128], strides = [1, 1]} : vector<64x384xf32> to vector<64x128xf32>
    %5 = vector.extract_strided_slice %3 {offsets = [0, 128], sizes = [64, 128], strides = [1, 1]} : vector<64x384xf32> to vector<64x128xf32>
    %6 = vector.extract_strided_slice %3 {offsets = [0, 256], sizes = [64, 128], strides = [1, 1]} : vector<64x384xf32> to vector<64x128xf32>
    %cst_4 = arith.constant 0.353553385 : f32
    %7 = vector.broadcast %cst_4 : f32 to vector<64x128xf32>
    %8 = arith.mulf %4, %7 : vector<64x128xf32>
    %9 = vector.shape_cast %8 : vector<64x128xf32> to vector<4x16x128xf32>
    %10 = vector.shape_cast %5 : vector<64x128xf32> to vector<4x16x128xf32>
    %11 = vector.shape_cast %6 : vector<64x128xf32> to vector<4x16x128xf32>
    %cst_5 = arith.constant 0.000000e+00 : f32
    %12 = vector.broadcast %cst_5 : f32 to vector<64x96xf32>
    %c0_6 = arith.constant 0 : index
    %c32 = arith.constant 32 : index
    %13 = vector.load %arg7[%c0_6, %c32] : memref<64x128xf32, #tpu.memory_space<vmem>>, vector<64x96xf32>
    tpu.vector_store %arg7[%c0_6, %c32], %12 {strides = array<i32>} : memref<64x128xf32, #tpu.memory_space<vmem>>, vector<64x96xf32>,
    %14 = vector.extract_strided_slice %9 {offsets = [0, 0, 0], sizes = [4, 16, 8], strides = [1, 1, 1]} : vector<4x16x128xf32> to vector<4x16x8xf32>
    %15 = vector.extract_strided_slice %10 {offsets = [0, 0, 0], sizes = [4, 16, 8], strides = [1, 1, 1]} : vector<4x16x128xf32> to vector<4x16x8xf32>
    %16 = vector.extract_strided_slice %11 {offsets = [0, 0, 0], sizes = [4, 16, 8], strides = [1, 1, 1]} : vector<4x16x128xf32> to vector<4x16x8xf32>
    "tpu.trace_start"() <{level = 10 : i32, message = "bqd,bkd->bqk"}> : () -> ()
    %cst_7 = arith.constant dense<0.000000e+00> : vector<4x16x16xf32>
    %17 = tpu.matmul %14, %15, %cst_7 {dimension_numbers = #tpu.dot_dimension_numbers<[2], [2], [1], [1], [0, 0, 0, 1, 1, 1], [0], [0]>} : vector<4x16x8xf32>, vector<4x16x8xf32>, vector<4x16x16xf32> -> vector<4x16x16xf32>
    "tpu.trace_stop"() : () -> ()
    %c0_8 = arith.constant 0 : index
    %c0_9 = arith.constant 0 : index
    %c0_10 = arith.constant 0 : index
    %c0_11 = arith.constant 0 : index
    %18 = vector.load %arg3[%c0_8, %c0_9, %c0_10, %c0_11] : memref<4x1x16x16xf32, #tpu.memory_space<vmem>>, vector<1x1x16x16xf32>
    %19 = vector.shape_cast %18 : vector<1x1x16x16xf32> to vector<1x16x16xf32>
    %20 = vector.broadcast %19 : vector<1x16x16xf32> to vector<4x16x16xf32>
    %21 = arith.addf %17, %20 : vector<4x16x16xf32>
    %cst_12 = arith.constant dense<0xFF800000> : vector<4x16xf32>
    %22 = vector.multi_reduction <maximumf>, %21, %cst_12 [2] : vector<4x16x16xf32> to vector<4x16xf32>
    %23 = vector.shape_cast %22 : vector<4x16xf32> to vector<4x16x1xf32>
    %24 = vector.broadcast %23 : vector<4x16x1xf32> to vector<4x16x16xf32>
    %25 = arith.subf %21, %24 : vector<4x16x16xf32>
    %26 = math.exp %25 : vector<4x16x16xf32>
    %cst_13 = arith.constant dense<0.000000e+00> : vector<4x16xf32>
    %27 = vector.multi_reduction <add>, %26, %cst_13 [2] : vector<4x16x16xf32> to vector<4x16xf32>
    %28 = vector.shape_cast %27 : vector<4x16xf32> to vector<4x16x1xf32>
    %29 = tpu.reciprocal %28 : vector<4x16x1xf32> -> vector<4x16x1xf32>
    %30 = vector.broadcast %29 : vector<4x16x1xf32> to vector<4x16x16xf32>
    %31 = arith.mulf %26, %30 : vector<4x16x16xf32>
    "tpu.trace_start"() <{level = 10 : i32, message = "bqk,bkd->bqd"}> : () -> ()
    %cst_14 = arith.constant dense<0.000000e+00> : vector<4x16x8xf32>
    %32 = tpu.matmul %31, %16, %cst_14 {dimension_numbers = #tpu.dot_dimension_numbers<[2], [1], [1], [2], [0, 0, 0, 1, 1, 2], [0], [0]>} : vector<4x16x16xf32>, vector<4x16x8xf32>, vector<4x16x8xf32> -> vector<4x16x8xf32>
    "tpu.trace_stop"() : () -> ()
    %33 = vector.shape_cast %32 : vector<4x16x8xf32> to vector<64x8xf32>
    %c0_15 = arith.constant 0 : index
    %c0_16 = arith.constant 0 : index
    %34 = vector.load %arg7[%c0_15, %c0_16] : memref<64x128xf32, #tpu.memory_space<vmem>>, vector<64x8xf32>
    tpu.vector_store %arg7[%c0_15, %c0_16], %33 {strides = array<i32>} : memref<64x128xf32, #tpu.memory_space<vmem>>, vector<64x8xf32>,
    %35 = vector.extract_strided_slice %9 {offsets = [0, 0, 8], sizes = [4, 16, 8], strides = [1, 1, 1]} : vector<4x16x128xf32> to vector<4x16x8xf32>
    %36 = vector.extract_strided_slice %10 {offsets = [0, 0, 8], sizes = [4, 16, 8], strides = [1, 1, 1]} : vector<4x16x128xf32> to vector<4x16x8xf32>
    %37 = vector.extract_strided_slice %11 {offsets = [0, 0, 8], sizes = [4, 16, 8], strides = [1, 1, 1]} : vector<4x16x128xf32> to vector<4x16x8xf32>
    "tpu.trace_start"() <{level = 10 : i32, message = "bqd,bkd->bqk"}> : () -> ()
    %cst_17 = arith.constant dense<0.000000e+00> : vector<4x16x16xf32>
    %38 = tpu.matmul %35, %36, %cst_17 {dimension_numbers = #tpu.dot_dimension_numbers<[2], [2], [1], [1], [0, 0, 0, 1, 1, 1], [0], [0]>} : vector<4x16x8xf32>, vector<4x16x8xf32>, vector<4x16x16xf32> -> vector<4x16x16xf32>
    "tpu.trace_stop"() : () -> ()
    %c1 = arith.constant 1 : index
    %c0_18 = arith.constant 0 : index
    %c0_19 = arith.constant 0 : index
    %c0_20 = arith.constant 0 : index
    %39 = vector.load %arg3[%c1, %c0_18, %c0_19, %c0_20] : memref<4x1x16x16xf32, #tpu.memory_space<vmem>>, vector<1x1x16x16xf32>
    %40 = vector.shape_cast %39 : vector<1x1x16x16xf32> to vector<1x16x16xf32>
    %41 = vector.broadcast %40 : vector<1x16x16xf32> to vector<4x16x16xf32>
    %42 = arith.addf %38, %41 : vector<4x16x16xf32>
    %cst_21 = arith.constant dense<0xFF800000> : vector<4x16xf32>
    %43 = vector.multi_reduction <maximumf>, %42, %cst_21 [2] : vector<4x16x16xf32> to vector<4x16xf32>
    %44 = vector.shape_cast %43 : vector<4x16xf32> to vector<4x16x1xf32>
    %45 = vector.broadcast %44 : vector<4x16x1xf32> to vector<4x16x16xf32>
    %46 = arith.subf %42, %45 : vector<4x16x16xf32>
    %47 = math.exp %46 : vector<4x16x16xf32>
    %cst_22 = arith.constant dense<0.000000e+00> : vector<4x16xf32>
    %48 = vector.multi_reduction <add>, %47, %cst_22 [2] : vector<4x16x16xf32> to vector<4x16xf32>
    %49 = vector.shape_cast %48 : vector<4x16xf32> to vector<4x16x1xf32>
    %50 = tpu.reciprocal %49 : vector<4x16x1xf32> -> vector<4x16x1xf32>
    %51 = vector.broadcast %50 : vector<4x16x1xf32> to vector<4x16x16xf32>
    %52 = arith.mulf %47, %51 : vector<4x16x16xf32>
    "tpu.trace_start"() <{level = 10 : i32, message = "bqk,bkd->bqd"}> : () -> ()
    %cst_23 = arith.constant dense<0.000000e+00> : vector<4x16x8xf32>
    %53 = tpu.matmul %52, %37, %cst_23 {dimension_numbers = #tpu.dot_dimension_numbers<[2], [1], [1], [2], [0, 0, 0, 1, 1, 2], [0], [0]>} : vector<4x16x16xf32>, vector<4x16x8xf32>, vector<4x16x8xf32> -> vector<4x16x8xf32>
    "tpu.trace_stop"() : () -> ()
    %54 = vector.shape_cast %53 : vector<4x16x8xf32> to vector<64x8xf32>
    %c0_24 = arith.constant 0 : index
    %c8 = arith.constant 8 : index
    %55 = vector.load %arg7[%c0_24, %c8] : memref<64x128xf32, #tpu.memory_space<vmem>>, vector<64x8xf32>
    tpu.vector_store %arg7[%c0_24, %c8], %54 {strides = array<i32>} : memref<64x128xf32, #tpu.memory_space<vmem>>, vector<64x8xf32>,
    %56 = vector.extract_strided_slice %9 {offsets = [0, 0, 16], sizes = [4, 16, 8], strides = [1, 1, 1]} : vector<4x16x128xf32> to vector<4x16x8xf32>
    %57 = vector.extract_strided_slice %10 {offsets = [0, 0, 16], sizes = [4, 16, 8], strides = [1, 1, 1]} : vector<4x16x128xf32> to vector<4x16x8xf32>
    %58 = vector.extract_strided_slice %11 {offsets = [0, 0, 16], sizes = [4, 16, 8], strides = [1, 1, 1]} : vector<4x16x128xf32> to vector<4x16x8xf32>
    "tpu.trace_start"() <{level = 10 : i32, message = "bqd,bkd->bqk"}> : () -> ()
    %cst_25 = arith.constant dense<0.000000e+00> : vector<4x16x16xf32>
    %59 = tpu.matmul %56, %57, %cst_25 {dimension_numbers = #tpu.dot_dimension_numbers<[2], [2], [1], [1], [0, 0, 0, 1, 1, 1], [0], [0]>} : vector<4x16x8xf32>, vector<4x16x8xf32>, vector<4x16x16xf32> -> vector<4x16x16xf32>
    "tpu.trace_stop"() : () -> ()
    %c2 = arith.constant 2 : index
    %c0_26 = arith.constant 0 : index
    %c0_27 = arith.constant 0 : index
    %c0_28 = arith.constant 0 : index
    %60 = vector.load %arg3[%c2, %c0_26, %c0_27, %c0_28] : memref<4x1x16x16xf32, #tpu.memory_space<vmem>>, vector<1x1x16x16xf32>
    %61 = vector.shape_cast %60 : vector<1x1x16x16xf32> to vector<1x16x16xf32>
    %62 = vector.broadcast %61 : vector<1x16x16xf32> to vector<4x16x16xf32>
    %63 = arith.addf %59, %62 : vector<4x16x16xf32>
    %cst_29 = arith.constant dense<0xFF800000> : vector<4x16xf32>
    %64 = vector.multi_reduction <maximumf>, %63, %cst_29 [2] : vector<4x16x16xf32> to vector<4x16xf32>
    %65 = vector.shape_cast %64 : vector<4x16xf32> to vector<4x16x1xf32>
    %66 = vector.broadcast %65 : vector<4x16x1xf32> to vector<4x16x16xf32>
    %67 = arith.subf %63, %66 : vector<4x16x16xf32>
    %68 = math.exp %67 : vector<4x16x16xf32>
    %cst_30 = arith.constant dense<0.000000e+00> : vector<4x16xf32>
    %69 = vector.multi_reduction <add>, %68, %cst_30 [2] : vector<4x16x16xf32> to vector<4x16xf32>
    %70 = vector.shape_cast %69 : vector<4x16xf32> to vector<4x16x1xf32>
    %71 = tpu.reciprocal %70 : vector<4x16x1xf32> -> vector<4x16x1xf32>
    %72 = vector.broadcast %71 : vector<4x16x1xf32> to vector<4x16x16xf32>
    %73 = arith.mulf %68, %72 : vector<4x16x16xf32>
    "tpu.trace_start"() <{level = 10 : i32, message = "bqk,bkd->bqd"}> : () -> ()
    %cst_31 = arith.constant dense<0.000000e+00> : vector<4x16x8xf32>
    %74 = tpu.matmul %73, %58, %cst_31 {dimension_numbers = #tpu.dot_dimension_numbers<[2], [1], [1], [2], [0, 0, 0, 1, 1, 2], [0], [0]>} : vector<4x16x16xf32>, vector<4x16x8xf32>, vector<4x16x8xf32> -> vector<4x16x8xf32>
    "tpu.trace_stop"() : () -> ()
    %75 = vector.shape_cast %74 : vector<4x16x8xf32> to vector<64x8xf32>
    %c0_32 = arith.constant 0 : index
    %c16 = arith.constant 16 : index
    %76 = vector.load %arg7[%c0_32, %c16] : memref<64x128xf32, #tpu.memory_space<vmem>>, vector<64x8xf32>
    tpu.vector_store %arg7[%c0_32, %c16], %75 {strides = array<i32>} : memref<64x128xf32, #tpu.memory_space<vmem>>, vector<64x8xf32>,
    %77 = vector.extract_strided_slice %9 {offsets = [0, 0, 24], sizes = [4, 16, 8], strides = [1, 1, 1]} : vector<4x16x128xf32> to vector<4x16x8xf32>
    %78 = vector.extract_strided_slice %10 {offsets = [0, 0, 24], sizes = [4, 16, 8], strides = [1, 1, 1]} : vector<4x16x128xf32> to vector<4x16x8xf32>
    %79 = vector.extract_strided_slice %11 {offsets = [0, 0, 24], sizes = [4, 16, 8], strides = [1, 1, 1]} : vector<4x16x128xf32> to vector<4x16x8xf32>
    "tpu.trace_start"() <{level = 10 : i32, message = "bqd,bkd->bqk"}> : () -> ()
    %cst_33 = arith.constant dense<0.000000e+00> : vector<4x16x16xf32>
    %80 = tpu.matmul %77, %78, %cst_33 {dimension_numbers = #tpu.dot_dimension_numbers<[2], [2], [1], [1], [0, 0, 0, 1, 1, 1], [0], [0]>} : vector<4x16x8xf32>, vector<4x16x8xf32>, vector<4x16x16xf32> -> vector<4x16x16xf32>
    "tpu.trace_stop"() : () -> ()
    %c3 = arith.constant 3 : index
    %c0_34 = arith.constant 0 : index
    %c0_35 = arith.constant 0 : index
    %c0_36 = arith.constant 0 : index
    %81 = vector.load %arg3[%c3, %c0_34, %c0_35, %c0_36] : memref<4x1x16x16xf32, #tpu.memory_space<vmem>>, vector<1x1x16x16xf32>
    %82 = vector.shape_cast %81 : vector<1x1x16x16xf32> to vector<1x16x16xf32>
    %83 = vector.broadcast %82 : vector<1x16x16xf32> to vector<4x16x16xf32>
    %84 = arith.addf %80, %83 : vector<4x16x16xf32>
    %cst_37 = arith.constant dense<0xFF800000> : vector<4x16xf32>
    %85 = vector.multi_reduction <maximumf>, %84, %cst_37 [2] : vector<4x16x16xf32> to vector<4x16xf32>
    %86 = vector.shape_cast %85 : vector<4x16xf32> to vector<4x16x1xf32>
    %87 = vector.broadcast %86 : vector<4x16x1xf32> to vector<4x16x16xf32>
    %88 = arith.subf %84, %87 : vector<4x16x16xf32>
    %89 = math.exp %88 : vector<4x16x16xf32>
    %cst_38 = arith.constant dense<0.000000e+00> : vector<4x16xf32>
    %90 = vector.multi_reduction <add>, %89, %cst_38 [2] : vector<4x16x16xf32> to vector<4x16xf32>
    %91 = vector.shape_cast %90 : vector<4x16xf32> to vector<4x16x1xf32>
    %92 = tpu.reciprocal %91 : vector<4x16x1xf32> -> vector<4x16x1xf32>
    %93 = vector.broadcast %92 : vector<4x16x1xf32> to vector<4x16x16xf32>
    %94 = arith.mulf %89, %93 : vector<4x16x16xf32>
    "tpu.trace_start"() <{level = 10 : i32, message = "bqk,bkd->bqd"}> : () -> ()
    %cst_39 = arith.constant dense<0.000000e+00> : vector<4x16x8xf32>
    %95 = tpu.matmul %94, %79, %cst_39 {dimension_numbers = #tpu.dot_dimension_numbers<[2], [1], [1], [2], [0, 0, 0, 1, 1, 2], [0], [0]>} : vector<4x16x16xf32>, vector<4x16x8xf32>, vector<4x16x8xf32> -> vector<4x16x8xf32>
    "tpu.trace_stop"() : () -> ()
    %96 = vector.shape_cast %95 : vector<4x16x8xf32> to vector<64x8xf32>
    %c0_40 = arith.constant 0 : index
    %c24 = arith.constant 24 : index
    %97 = vector.load %arg7[%c0_40, %c24] : memref<64x128xf32, #tpu.memory_space<vmem>>, vector<64x8xf32>
    tpu.vector_store %arg7[%c0_40, %c24], %96 {strides = array<i32>} : memref<64x128xf32, #tpu.memory_space<vmem>>, vector<64x8xf32>,
    %c0_41 = arith.constant 0 : index
    %c0_42 = arith.constant 0 : index
    %98 = vector.load %arg7[%c0_41, %c0_42] : memref<64x128xf32, #tpu.memory_space<vmem>>, vector<64x128xf32>
    %c0_43 = arith.constant 0 : index
    %c0_44 = arith.constant 0 : index
    %99 = vector.load %arg4[%c0_43, %c0_44] : memref<128x128xf32, #tpu.memory_space<vmem>>, vector<128x128xf32>
    %cst_45 = arith.constant dense<0.000000e+00> : vector<64x128xf32>
    %100 = tpu.matmul %98, %99, %cst_45 {dimension_numbers = #tpu.dot_dimension_numbers<[1], [0], [0], [1], [0, 0, 1, 1], [], []>} : vector<64x128xf32>, vector<128x128xf32>, vector<64x128xf32> -> vector<64x128xf32>
    %c0_46 = arith.constant 0 : index
    %c0_47 = arith.constant 0 : index
    %101 = vector.load %arg5[%c0_46, %c0_47] : memref<1x128xf32, #tpu.memory_space<vmem>>, vector<1x128xf32>
    %102 = vector.broadcast %101 : vector<1x128xf32> to vector<64x128xf32>
    %103 = arith.addf %100, %102 : vector<64x128xf32>
    %104 = vector.shape_cast %103 : vector<64x128xf32> to vector<4x16x128xf32>
    %c0_48 = arith.constant 0 : index
    %c0_49 = arith.constant 0 : index
    %c0_50 = arith.constant 0 : index
    %105 = vector.load %arg6[%c0_48, %c0_49, %c0_50] : memref<4x16x128xf32, #tpu.memory_space<vmem>>, vector<4x16x128xf32>
    tpu.vector_store %arg6[%c0_48, %c0_49, %c0_50], %104 {strides = array<i32>} : memref<4x16x128xf32, #tpu.memory_space<vmem>>, vector<4x16x128xf32>,
    return
  }
  func.func @transform_0(%arg0: i32) -> (i32, i32, i32) {
    %c0_i32 = arith.constant 0 : i32
    %c0_i32_0 = arith.constant 0 : i32
    %c0_i32_1 = arith.constant 0 : i32
    return %arg0, %c0_i32, %c0_i32_0 : i32, i32, i32
  }
  func.func @transform_1(%arg0: i32) -> (i32, i32) {
    %c0_i32 = arith.constant 0 : i32
    %c0_i32_0 = arith.constant 0 : i32
    %c0_i32_1 = arith.constant 0 : i32
    return %c0_i32, %c0_i32_0 : i32, i32
  }
  func.func @transform_2(%arg0: i32) -> (i32, i32, i32, i32) {
    %c0_i32 = arith.constant 0 : i32
    %c0_i32_0 = arith.constant 0 : i32
    %c0_i32_1 = arith.constant 0 : i32
    %c0_i32_2 = arith.constant 0 : i32
    %c0_i32_3 = arith.constant 0 : i32
    return %c0_i32, %c0_i32_0, %c0_i32_1, %c0_i32_2 : i32, i32, i32, i32
  }
  func.func @transform_3(%arg0: i32) -> (i32, i32) {
    %c0_i32 = arith.constant 0 : i32
    %c0_i32_0 = arith.constant 0 : i32
    %c0_i32_1 = arith.constant 0 : i32
    return %c0_i32, %c0_i32_0 : i32, i32
  }
  func.func @transform_4(%arg0: i32) -> (i32, i32) {
    %c0_i32 = arith.constant 0 : i32
    %c0_i32_0 = arith.constant 0 : i32
    %c0_i32_1 = arith.constant 0 : i32
    return %c0_i32, %c0_i32_0 : i32, i32
  }
  func.func @transform_5(%arg0: i32) -> (i32, i32, i32) {
    %c0_i32 = arith.constant 0 : i32
    %c0_i32_0 = arith.constant 0 : i32
    %c0_i32_1 = arith.constant 0 : i32
    return %arg0, %c0_i32, %c0_i32_0 : i32, i32, i32
  }
}

</mosaic_0001>

<bundles_post_ra>
// kernel: tpu_custom_call.1
= control target key start
LH: loop header
LB: loop body
LE: loop exit
PB: predicated region body
PF: predicated region fallthrough
CT: control target
= control target key end

     0   :  { %10 = vsyncpa [#allocation4], 0  ;;  %s6480_s0 = inlined_call_operand.hbm [shape: f32[8,16,128], index: 0, kind: input, shape index: {}]   ;;  %s6481_s1 = inlined_call_operand.hbm [shape: f32[128,384], index: 1, kind: input, shape index: {}]   ;;  %s6482_s2 = inlined_call_operand.hbm [shape: f32[4,1,16,16], index: 2, kind: input, shape index: {}]   ;;  %s6483_s3 = inlined_call_operand.hbm [shape: f32[128,128], index: 3, kind: input, shape index: {}]   ;;  %s6484_s4 = inlined_call_operand.vmem [shape: f32[1,128], index: 4, kind: input, shape index: {}]   ;;  %s6485_s5 = inlined_call_operand.hbm [shape: f32[8,16,128], index: 5, kind: output, shape index: {}]  }
   0x1   :  { %12 = vsyncpa [#allocation4 + $0x1], 0 }
   0x2   :  { %13 = vsyncpa [#allocation7], 0 }
   0x3   :  { %14 = vsyncpa [#allocation10], 0 }
   0x4   :  { %15 = vsyncpa [#allocation5], 0 }
   0x5   :  { %17 = vsyncpa [#allocation5 + $0x1], 0  ;;  %s5611_s18 = smov 0   ;;  %s5613_s19 = smov 0  }
   0x6   :  { %s5615_s20 = smov 0   ;;  %s5617_s21 = smov 0  }
   0x7 LB: > { %s5632_s22 = sadd.s32 4294967295, %s5562_s21   ;;  %s4154_s23 = sadd.s32 4294967294, %s5562_s21   ;;  %s5562_s21 = sphi %s5617_s21, %s6510_s21   ;;  %s5558_s20 = sphi %s5615_s20, %s6509_s20   ;;  %s5554_s19 = sphi %s5613_s19, %s6508_s19   ;;  %s5550_s18 = sphi %s5611_s18, %s6507_s18  }
   0x8   : > { %p43_p0 = scmp.ne.s32.totalorder %s5554_s19, %s5550_s18  ;;  %p6486_p1 = scmp.eq.s32.totalorder %s5632_s22, 0 }
   0x9   : > { %p157_p3 = scmp.eq.s32.totalorder %s4154_s23, 1  ;;  %p4155_p5 = scmp.ge.s32.totalorder %s5562_s21, 1 }
   0xa   : > { %p5641_p4 = por %p6486_p1, %p43_p0  ;;  %p164_p7 = scmp.lt.s32.totalorder %s5562_s21, 3 }
   0xb   : > { %p5646_p6 = por %p157_p3, %p43_p0  ;;  %s5564_s27 = smov [#allocation6]  }
   0xc   : > { %s6489_s24 = scalar_select %p5641_p4, 1, 0 }
   0xd   : > { %s6490_s25 = scalar_select %p5646_p6, 1, 0 }
   0xe   : > { %p5651_p8 = pnand %p4155_p5, %p164_p7  ;;  %s176_s28 = sshll.u32 %s5564_s27, 4  ;;  %s5655_s28 = int_to_ptr.vmem [resolvable:$true] %s176_s28 }
   0xf   : > { %s5565_s30 = smov [#allocation8]   ;;  %s5374_s9 = scalar_lea.hbm %s6481_s1, 6144 }
  0x10   : > { %s6491_s26 = scalar_select %p5651_p8, 1, 0 }
  0x11   : > { %p5053_p9 = pneg %p5651_p8  ;;  %s189_s6 = sshll.u32 %s5565_s30, 4  ;;  %s5666_s6 = int_to_ptr.vmem [resolvable:$true] %s189_s6 }
  0x12   : > { %p5375_p12 = scmp.ne.s32.totalorder %s6481_s1, %s5374_s9  ;;  %p5381_p5 = scmp.lt.u32.totalorder %s5374_s9, %s6481_s1 }
  0x13   : > { %p5662_p11 = pnand %p5053_p9, %p6486_p1 }
  0x15   : > { %p5676_p13 = pneg %p5662_p11 }
  0x17   : > { %p5377_p0 = pnand %p5676_p13, %p5375_p12 }
  0x19   : > { %p5378_p3 = pneg %p5377_p0 }
  0x1b   : > { %p5383_p7 = pnand %p5381_p5, %p5378_p3 }
  0x1d   : > { %5386 = shalt.err (!%p5383_p7)
}
  0x1e   : > { %s5387_s15 = scalar_lea.vmem %s5655_s28, 6144  ;;  %p5395_p2 = scmp.lt.s32.totalorder %s5655_s28, %s5655_s28 }
  0x1f   : > { %p5388_p9 = scmp.ne.s32.totalorder %s5655_s28, %s5387_s15  ;;  %p5396_p6 = scmp.lt.s32.totalorder %s5387_s15, %s5387_s15 }
  0x21   : > { %p5390_p10 = pnand %p5388_p9, %p5676_p13  ;;  %p5397_p12 = por %p5396_p6, %p5395_p2 }
  0x23   : > { %p5391_p1 = pneg %p5390_p10 }
  0x25   : > { %p5398_p0 = pnand %p5397_p12, %p5391_p1 }
  0x27   : > { %5401 = shalt.err (!%p5398_p0)
}
  0x28   : > { %s5566_s16 = smov 384   ;;  %s5567_s17 = smov 24  }
  0x29   : > { %5056 = dma.hbm_to_vmem [thread:$0]  (!%p5662_p11), %s6481_s1, 6144, %s5655_s28, [#allocation7], %s5566_s16, %s5566_s16, %s5567_s17  }
  0x2a   : > { %s5402_s8 = scalar_lea.hbm %s6482_s2, 1024 }
  0x2b   : > { %p5403_p2 = scmp.ne.s32.totalorder %s6482_s2, %s5402_s8  ;;  %p5409_p10 = scmp.lt.u32.totalorder %s5402_s8, %s6482_s2 }
  0x2d   : > { %p5405_p1 = pnand %p5403_p2, %p5676_p13 }
  0x2f   : > { %p5406_p6 = pneg %p5405_p1 }
  0x31   : > { %p5411_p3 = pnand %p5409_p10, %p5406_p6 }
  0x33   : > { %5414 = shalt.err (!%p5411_p3)
}
  0x34   : > { %s5415_s28 = scalar_lea.vmem %s5666_s6, 1024  ;;  %p5423_p12 = scmp.lt.s32.totalorder %s5666_s6, %s5666_s6 }
  0x35   : > { %p5416_p5 = scmp.ne.s32.totalorder %s5666_s6, %s5415_s28  ;;  %p5424_p0 = scmp.lt.s32.totalorder %s5415_s28, %s5415_s28 }
  0x37   : > { %p5418_p7 = pnand %p5416_p5, %p5676_p13  ;;  %p5425_p2 = por %p5424_p0, %p5423_p12 }
  0x39   : > { %p5419_p9 = pneg %p5418_p7 }
  0x3b   : > { %p5426_p1 = pnand %p5425_p2, %p5419_p9 }
  0x3d   : > { %5429 = shalt.err (!%p5426_p1)
}
  0x3e   : > { %s5568_s14 = smov 128   ;;  %s5569_s15 = smov 8  }
  0x3f   : > { %5059 = dma.hbm_to_vmem [thread:$0]  (!%p5662_p11), %s6482_s2, 1024, %s5666_s6, [#allocation7], %s5568_s14, %s5568_s14, %s5569_s15  }
  0x40   : > { %s5570_s23 = smov [#allocation9]   ;;  %s5724_s30 = sadd.s32 1, %s5562_s21  }
  0x41   : > { %s202_s27 = sshll.u32 %s5570_s23, 4  ;;  %s5430_s9 = scalar_lea.hbm %s6483_s3, 2048  ;;  %s203_s27 = int_to_ptr.vmem [resolvable:$true] %s202_s27 }
  0x42   : > { %p5431_p6 = scmp.ne.s32.totalorder %s6483_s3, %s5430_s9  ;;  %p5437_p5 = scmp.lt.u32.totalorder %s5430_s9, %s6483_s3 }
  0x44   : > { %p5433_p10 = pnand %p5431_p6, %p5676_p13 }
  0x46   : > { %p5434_p3 = pneg %p5433_p10 }
  0x48   : > { %p5439_p7 = pnand %p5437_p5, %p5434_p3 }
  0x4a   : > { %5442 = shalt.err (!%p5439_p7)
}
  0x4b   : > { %s5443_s6 = scalar_lea.vmem %s203_s27, 2048  ;;  %p5451_p2 = scmp.lt.s32.totalorder %s203_s27, %s203_s27 }
  0x4c   : > { %p5444_p9 = scmp.ne.s32.totalorder %s203_s27, %s5443_s6  ;;  %p5452_p1 = scmp.lt.s32.totalorder %s5443_s6, %s5443_s6 }
  0x4e   : > { %p5446_p12 = pnand %p5444_p9, %p5676_p13  ;;  %p5453_p4 = por %p5452_p1, %p5451_p2 }
  0x50   : > { %p5447_p0 = pneg %p5446_p12 }
  0x52   : > { %p5454_p8 = pnand %p5453_p4, %p5447_p0 }
  0x54   : > { %5457 = shalt.err (!%p5454_p8)
}
  0x55   : > { %5062 = dma.hbm_to_vmem [thread:$0]  (!%p5662_p11), %s6483_s3, 2048, %s203_s27, [#allocation10], %s5568_s14, %s5568_s14, %s5569_s15  }
  0x56   : > { %s27_s12 = ssub.s32 %s5562_s21, %s5724_s30  ;;  %s30_s29 = sadd.s32 1, %s5558_s20 }
  0x57   : > { %p28_p4 = scmp.eq.s32.totalorder %s27_s12, 0  ;;  %p37_p8 = scmp.ne.s32.totalorder %s5558_s20, %s5554_s19 }
  0x58   : > { %p38_p13 = scmp.eq.s32.totalorder %s5562_s21, 0  ;;  %p5074_p6 = scmp.lt.s32.totalorder %s5562_s21, 2 }
  0x59   : > { %s5755_s23 = scalar_select %p28_p4, %s5558_s20, %s30_s29  }
  0x5a   : > { %p39_p10 = por %p38_p13, %p37_p8  ;;  %p6494_p3 = scmp.eq.s32.totalorder %s5632_s22, 1 }
  0x5b   : > { %s219_s8 = sand.u32 1, %s5558_s20   ;;  %s4274_s9 = sshll.u32 %s5562_s21, 10 }
  0x5c   : > { %p5759_p5 = por %p6494_p3, %p37_p8  ;;  %s4160_s10 = sshll.u32 %s219_s8, 6 }
  0x5d   : > { %s5768_s27 = scalar_lea.hbm %s6480_s0, %s4274_s9  ;;  %s223_s28 = scalar_lea.vmem [#allocation3], %s4160_s10 }
  0x5e   : > { %s231_s6 = sshll.u32 %s223_s28, 4  ;;  %p5770_p11 = pnand %p5074_p6, %p39_p10  ;;  %s5774_s6 = int_to_ptr.vmem [resolvable:$true] %s231_s6 }
  0x5f   : > { %s5776_s17 = scalar_lea.sflag [#allocation4], %s219_s8  ;;  %s5458_s12 = scalar_lea.hbm %s5768_s27, 1024 }
  0x60   : > { %p5459_p7 = scmp.ne.s32.totalorder %s5768_s27, %s5458_s12  ;;  %p5460_p9 = pneg %p5770_p11 }
  0x61   : > { %s5463_s10 = scalar_lea.hbm %s6480_s0, 2048  ;;  %p5464_p2 = scmp.lt.u32.totalorder %s5768_s27, %s6480_s0 }
  0x62   : > { %p5461_p12 = pnand %p5460_p9, %p5459_p7  ;;  %p5465_p1 = scmp.lt.u32.totalorder %s5463_s10, %s5458_s12 }
  0x63   : > { %p5467_p8 = scmp.lt.u32.totalorder %s5458_s12, %s5768_s27 }
  0x64   : > { %p5462_p0 = pneg %p5461_p12  ;;  %p5466_p4 = por %p5465_p1, %p5464_p2 }
  0x66   : > { %p5468_p13 = por %p5467_p8, %p5466_p4 }
  0x68   : > { %p5469_p6 = pnand %p5468_p13, %p5462_p0 }
  0x6a   : > { %5472 = shalt.err (!%p5469_p6)
}
  0x6b   : > { %s5473_s8 = scalar_lea.vmem %s5774_s6, 1024  ;;  %s5571_s28 = smov [#allocation3]  }
  0x6c   : > { %p5474_p10 = scmp.ne.s32.totalorder %s5774_s6, %s5473_s8  ;;  %s5478_s29 = sshll.u32 %s5571_s28, 4  ;;  %s5479_s29 = int_to_ptr.vmem [resolvable:$false] %s5478_s29 }
  0x6d   : > { %s5480_s9 = scalar_lea.vmem %s5479_s29, 2048  ;;  %p5481_p12 = scmp.lt.s32.totalorder %s5774_s6, %s5479_s29 }
  0x6e   : > { %p5476_p3 = pnand %p5474_p10, %p5460_p9  ;;  %p5482_p2 = scmp.lt.s32.totalorder %s5480_s9, %s5473_s8 }
  0x70   : > { %p5477_p7 = pneg %p5476_p3  ;;  %p5483_p1 = por %p5482_p2, %p5481_p12 }
  0x72   : > { %p5484_p4 = pnand %p5483_p1, %p5477_p7 }
  0x74   : > { %5487 = shalt.err (!%p5484_p4)
}
  0x75   : > { %5066 = dma.hbm_to_vmem [thread:$0]  (!%p5770_p11), %s5768_s27, 1024, %s5774_s6, %s5776_s17, %s5568_s14, %s5568_s14, %s5569_s15  }
  0x76   : > { %p6497_p9 = scmp.ne.s32.totalorder %s6491_s26, 0 }
  0x77   : > { %s5810_s12 = sand.u32 (!%p6497_p9), 1, %s5554_s19   ;;  %p6498_p0 = scmp.ne.s32.totalorder (!%p6497_p9), %s6489_s24, 0 }
  0x78   : > { %243 = sbr.rel (%p6497_p9) target bundleno = 3180 (0xc6c), region = 40  ;;  %s4165_s10 = sshll.u32 (!%p6497_p9), %s5810_s12, 6 }
  0x79   : > { %s246_s11 = scalar_lea.sflag (!%p6497_p9), [#allocation4], %s5810_s12  ;;  %s5816_s16 = scalar_lea.vmem (!%p6497_p9), [#allocation3], %s4165_s10 }
  0x7f   : > { %5533 = dma.done.wait (%p6498_p0), %s246_s11, 1024  }
  0x80   : > { %5535 = vsyncadd (%p6498_p0), %s246_s11, 4294966272  ;;  %p6499_p11 = scmp.eq.s32.totalorder %s5632_s22, 0 }
  0x82   : > { %5537 = dma.done.wait (%p6499_p11), [#allocation7], 7168   ;;  %p6500_p8 = pmov %p6499_p11 }
  0x84   : > { %5539 = vsyncadd (%p6500_p8), [#allocation7], 4294960128  ;;  %p6501_p13 = pmov %p6500_p8 }
  0x85   : > { %p6502_p6 = pmov %p6500_p8 }
  0x86   : > { %5541 = dma.done.wait (%p6501_p13), [#allocation10], 2048  }
  0x87   : > { %5543 = vsyncadd (%p6502_p6), [#allocation10], 4294965248  ;;  %v5572_v0 = vmov 0.0   ;;  %v299_v1 = vld [vmem:[#allocation6 + $0x8] sm:$0xff]  ;;  %v302_v2 = vld [vmem:[#allocation6 + $0x20] sm:$0xff]  ;;  %vm583_vm0 = vcmask 64512  }
  0x88   : > { %410 = vmatprep.mubr.f32.mxu1 %v5572_v0  ;;  %v298_v3 = vld [vmem:[#allocation6] sm:$0xff]  ;;  %v4765_v4 = vpack.c.bf16 %v302_v2, %v299_v1  ;;  %v301_v5 = vld [vmem:[#allocation6 + $0x18] sm:$0xff]  ;;  %v308_v7 = vld [vmem:[#allocation6 + $0x50] sm:$0xff]  ;;  %vm932_vm2 = vcmask 130048   ;;  %s5573_s24 = smov 120   ;;  %vm572_vm3 = vcmask 1047808  }
  0x89   : > { %v305_v6 = vld [vmem:[#allocation6 + $0x38] sm:$0xff]  ;;  %v4767_v8 = vpack.c.bf16 %v301_v5, %v298_v3  ;;  %v304_v10 = vld [vmem:[#allocation6 + $0x30] sm:$0xff]  ;;  %v307_v11 = vld [vmem:[#allocation6 + $0x48] sm:$0xff]  ;;  %574 = vst.msk [vmem:[#allocation2 + $0x8] sm:$0xff] %vm572_vm3, %v5572_v0  ;;  %s5574_s26 = smov 112   ;;  %s5575_s14 = smov 104  }
  0x8a   : > { %v4769_v9 = vpack.c.bf16 %v308_v7, %v305_v6  ;;  %v311_v12 = vld [vmem:[#allocation6 + $0x68] sm:$0xff]  ;;  %4766 = vmatprep.subr.bf16.mxu1 %v4765_v4  ;;  %v314_v13 = vld [vmem:[#allocation6 + $0x80] sm:$0xff]  ;;  %v4771_v14 = vpack.c.bf16 %v307_v11, %v304_v10  ;;  %v313_v17 = vld [vmem:[#allocation6 + $0x78] sm:$0xff]  ;;  %573 = vst.msk [vmem:[#allocation2] sm:$0xff] %vm572_vm3, %v5572_v0  ;;  %s5576_s15 = smov 8   ;;  %s5577_s27 = smov 16  }
  0x8b   : > { %4768 = vmatpush1.bf16.msra.mxu1 %v4767_v8  ;;  %v4773_v15 = vpack.c.bf16 %v314_v13, %v311_v12  ;;  %v310_v16 = vld [vmem:[#allocation6 + $0x60] sm:$0xff]  ;;  %v317_v18 = vld [vmem:[#allocation6 + $0x98] sm:$0xff]  ;;  %v320_v19 = vld [vmem:[#allocation6 + $0xb0] sm:$0xff]  ;;  %575 = vst.msk [vmem:[#allocation2 + $0x10] sm:$0xff] %vm572_vm3, %v5572_v0  ;;  %vm2196_vm4 = vcmask 130112   ;;  %vm3040_vm5 = vcmask 195712  }
  0x8c   : > { %4770 = vmatprep.subr.bf16.mxu1 %v4769_v9  ;;  %v4775_v20 = vpack.c.bf16 %v313_v17, %v310_v16  ;;  %v4777_v21 = vpack.c.bf16 %v320_v19, %v317_v18  ;;  %v316_v22 = vld [vmem:[#allocation6 + $0x90] sm:$0xff]  ;;  %v319_v23 = vld [vmem:[#allocation6 + $0xa8] sm:$0xff]  ;;  %v326_v25 = vld [vmem:[#allocation6 + $0xe0] sm:$0xff]  ;;  %576 = vst.msk [vmem:[#allocation2 + $0x18] sm:$0xff] %vm572_vm3, %v5572_v0  ;;  %s5578_s6 = smov 24   ;;  %vm3884_vm6 = vcmask 261312  }
  0x8d   : > { %v323_v24 = vld [vmem:[#allocation6 + $0xc8] sm:$0xff]  ;;  %v5832_v26 = vld [vmem:[%s5816_s16] sm:$0xff]  ;;  %v4779_v27 = vpack.c.bf16 %v319_v23, %v316_v22  ;;  %v325_v29 = vld [vmem:[#allocation6 + $0xd8] sm:$0xff]  ;;  %577 = vst.msk [vmem:[#allocation2 + $0x20] sm:$0xff] %vm572_vm3, %v5572_v0  ;;  %s287_s8 = scalar_lea.vmem [#allocation11], %s4165_s10  ;;  %s4276_s29 = sshll.u32 %s5632_s22, 10 }
  0x8e   : > { %4485 = vmatprep.mubr.f32.mxu0 %v5832_v26  ;;  %v322_v28 = vld [vmem:[#allocation6 + $0xc0] sm:$0xff]  ;;  %v4781_v30 = vpack.c.bf16 %v326_v25, %v323_v24  ;;  %v329_v31 = vld [vmem:[#allocation6 + $0xf8] sm:$0xff]  ;;  %v300_v32 = vld [vmem:[#allocation6 + $0x10] sm:$0xff]  ;;  %578 = vst.msk [vmem:[#allocation2 + $0x28] sm:$0xff] %vm572_vm3, %v5572_v0  ;;  %s4052_s28 = sshll.u32 %s287_s8, 4  ;;  %s6435_s11 = scalar_lea.hbm %s6485_s5, %s4276_s29  ;;  %s6430_s28 = int_to_ptr.vmem [resolvable:$true] %s4052_s28 }
  0x8f   : > { %4772 = vmatpush1.bf16.msra.mxu1 %v4771_v14  ;;  %v303_v33 = vld [vmem:[#allocation6 + $0x28] sm:$0xff]  ;;  %v332_v34 = vld [vmem:[#allocation6 + $0x110] sm:$0xff]  ;;  %v306_v36 = vld [vmem:[#allocation6 + $0x40] sm:$0xff]  ;;  %v4783_v38 = vpack.c.bf16 %v325_v29, %v322_v28  ;;  %579 = vst.msk [vmem:[#allocation2 + $0x30] sm:$0xff] %vm572_vm3, %v5572_v0  ;;  %s5579_s22 = smov [#allocation11]  }
  0x90   : > { %4774 = vmatprep.subr.bf16.mxu1 %v4773_v15  ;;  %v4797_v35 = vpack.c.bf16 %v303_v33, %v300_v32  ;;  %v309_v37 = vld [vmem:[#allocation6 + $0x58] sm:$0xff]  ;;  %v328_v39 = vld [vmem:[#allocation6 + $0xf0] sm:$0xff]  ;;  %v4785_v41 = vpack.c.bf16 %v332_v34, %v329_v31  ;;  %v331_v42 = vld [vmem:[#allocation6 + $0x108] sm:$0xff]  ;;  %580 = vst.msk [vmem:[#allocation2 + $0x38] sm:$0xff] %vm572_vm3, %v5572_v0 }
  0x91   : > { %v4801_v40 = vpack.c.bf16 %v309_v37, %v306_v36  ;;  %v312_v43 = vld [vmem:[#allocation6 + $0x70] sm:$0xff]  ;;  %v315_v44 = vld [vmem:[#allocation6 + $0x88] sm:$0xff]  ;;  %v338_v46 = vld [vmem:[#allocation6 + $0x140] sm:$0xff]  ;;  %v4787_v47 = vpack.c.bf16 %v331_v42, %v328_v39 }
  0x92   : > { %4798 = vmatprep.subr.bf16.mxu0 %v4797_v35  ;;  %v335_v45 = vld [vmem:[#allocation6 + $0x128] sm:$0xff]  ;;  %v334_v48 = vld [vmem:[#allocation6 + $0x120] sm:$0xff]  ;;  %v4805_v49 = vpack.c.bf16 %v315_v44, %v312_v43  ;;  %v337_v51 = vld [vmem:[#allocation6 + $0x138] sm:$0xff] }
  0x93   : > { %4776 = vmatpush1.bf16.msra.mxu1 %v4775_v20  ;;  %4800 = vmatpush3.bf16.msra.mxu0 %v4797_v35  ;;  %v4789_v50 = vpack.c.bf16 %v338_v46, %v335_v45  ;;  %v318_v52 = vld [vmem:[#allocation6 + $0xa0] sm:$0xff]  ;;  %v321_v53 = vld [vmem:[#allocation6 + $0xb8] sm:$0xff]  ;;  %v344_v55 = vld [vmem:[#allocation6 + $0x170] sm:$0xff]  ;;  %v4791_v56 = vpack.c.bf16 %v337_v51, %v334_v48 }
  0x94   : > { %4778 = vmatprep.subr.bf16.mxu1 %v4777_v21  ;;  %4802 = vmatprep.subr.bf16.mxu0 %v4801_v40  ;;  %v341_v54 = vld [vmem:[#allocation6 + $0x158] sm:$0xff]  ;;  %v340_v57 = vld [vmem:[#allocation6 + $0x150] sm:$0xff]  ;;  %v4809_v58 = vpack.c.bf16 %v321_v53, %v318_v52  ;;  %v343_v60 = vld [vmem:[#allocation6 + $0x168] sm:$0xff] }
  0x95   : > { %v4793_v59 = vpack.c.bf16 %v344_v55, %v341_v54  ;;  %v324_v61 = vld [vmem:[#allocation6 + $0xd0] sm:$0xff]  ;;  %v327_v62 = vld [vmem:[#allocation6 + $0xe8] sm:$0xff]  ;;  %v4795_v63 = vpack.c.bf16 %v343_v60, %v340_v57  ;;  %v330_v2 = vld [vmem:[#allocation6 + $0x100] sm:$0xff] }
  0x96   : > { %v4813_v1 = vpack.c.bf16 %v327_v62, %v324_v61  ;;  %v333_v3 = vld [vmem:[#allocation6 + $0x118] sm:$0xff]  ;;  %v336_v5 = vld [vmem:[#allocation6 + $0x130] sm:$0xff]  ;;  %v339_v6 = vld [vmem:[#allocation6 + $0x148] sm:$0xff] }
  0x97   : > { %4780 = vmatpush1.bf16.msra.mxu1 %v4779_v27  ;;  %4804 = vmatpush3.bf16.msra.mxu0 %v4801_v40  ;;  %v4817_v4 = vpack.c.bf16 %v333_v3, %v330_v2  ;;  %v291_v7 = vld [vmem:[%s5816_s16 + $0x8] sm:$0xff]  ;;  %v4821_v8 = vpack.c.bf16 %v339_v6, %v336_v5  ;;  %v342_v9 = vld [vmem:[#allocation6 + $0x160] sm:$0xff]  ;;  %v345_v10 = vld [vmem:[#allocation6 + $0x178] sm:$0xff] }
  0x98   : > { %4782 = vmatprep.subr.bf16.mxu1 %v4781_v30  ;;  %4806 = vmatprep.subr.bf16.mxu0 %v4805_v49  ;;  %v292_v11 = vld [vmem:[%s5816_s16 + $0x10] sm:$0xff]  ;;  %v4825_v12 = vpack.c.bf16 %v345_v10, %v342_v9  ;;  %v293_v13 = vld [vmem:[%s5816_s16 + $0x18] sm:$0xff]  ;;  %v294_v14 = vld [vmem:[%s5816_s16 + $0x20] sm:$0xff] }
  0x99   : > { %v295_v15 = vld [vmem:[%s5816_s16 + $0x28] sm:$0xff]  ;;  %v296_v16 = vld [vmem:[%s5816_s16 + $0x30] sm:$0xff]  ;;  %v297_v17 = vld [vmem:[%s5816_s16 + $0x38] sm:$0xff]  ;;  %s4038_s16 = scalar_lea.sflag [#allocation5], %s5810_s12 }
  0x9a   : > { %vm5856_vm1 = vmpackc.low %vm583_vm0, %vm583_vm0  ;;  %v582_v6 = vld [vmem:[#allocation8 + $0x8] sm:$0xff] }
  0x9b   : > { %4784 = vmatpush1.bf16.msra.mxu1 %v4783_v38  ;;  %4808 = vmatpush3.bf16.msra.mxu0 %v4805_v49 }
  0x9c   : > { %4786 = vmatprep.subr.bf16.mxu1 %v4785_v41  ;;  %4810 = vmatprep.subr.bf16.mxu0 %v4809_v58 }
  0x9f   : > { %4788 = vmatpush1.bf16.msra.mxu1 %v4787_v47  ;;  %4812 = vmatpush3.bf16.msra.mxu0 %v4809_v58 }
  0xa0   : > { %4790 = vmatprep.subr.bf16.mxu1 %v4789_v50  ;;  %4814 = vmatprep.subr.bf16.mxu0 %v4813_v1 }
  0xa3   : > { %4792 = vmatpush1.bf16.msra.mxu1 %v4791_v56  ;;  %4816 = vmatpush3.bf16.msra.mxu0 %v4813_v1 }
  0xa4   : > { %4794 = vmatprep.subr.bf16.mxu1 %v4793_v59  ;;  %4818 = vmatprep.subr.bf16.mxu0 %v4817_v4 }
  0xa7   : > { %4796 = vmatpush1.bf16.msra.mxu1 %v4795_v63  ;;  %4820 = vmatpush3.bf16.msra.mxu0 %v4817_v4 }
  0xa8   : > { %5021 = vmatprep.subr.bf16.mxu1 %v4797_v35  ;;  %4822 = vmatprep.subr.bf16.mxu0 %v4821_v8 }
  0xaa   : > { %411 = vmatmul.mubr.f32.vlgmr.msra.gmra.mrb[0].mxu1 %v5832_v26 }
  0xab   : > { %416 = vmatprep.mubr.f32.mxu1 %v5572_v0  ;;  %5029 = vmatpush3.bf16.msra.mxu1 %v4797_v35 }
  0xac   : > { %5022 = vmatprep.subr.bf16.mxu1 %v4801_v40  ;;  %4824 = vmatpush3.bf16.msra.mxu0 %v4821_v8 }
  0xad   : > { %4826 = vmatprep.subr.bf16.mxu0 %v4825_v12 }
  0xae   : > { %417 = vmatmul.mubr.f32.gmra.mrb[2].mxu1 %v291_v7 }
  0xaf   : > { %422 = vmatprep.mubr.f32.mxu1 %v5572_v0  ;;  %5030 = vmatpush3.bf16.msra.mxu1 %v4801_v40 }
  0xb0   : > { %5023 = vmatprep.subr.bf16.mxu1 %v4805_v49  ;;  %4828 = vmatpush3.bf16.msra.mxu0 %v4825_v12 }
  0xb2   : > { %423 = vmatmul.mubr.f32.gmra.mrb[4].mxu1 %v292_v11 }
  0xb3   : > { %428 = vmatprep.mubr.f32.mxu1 %v5572_v0  ;;  %5031 = vmatpush3.bf16.msra.mxu1 %v4805_v49 }
  0xb4   : > { %5024 = vmatprep.subr.bf16.mxu1 %v4809_v58  ;;  %4486 = vmatmul.mubr.f32.vlgmr.msra.gmra.mrb[0].mxu0 %v291_v7 }
  0xb5   : > { %4488 = vmatprep.mubr.f32.mxu0 %v292_v11 }
  0xb6   : > { %429 = vmatmul.mubr.f32.gmra.mrb[6].mxu1 %v293_v13 }
  0xb7   : > { %434 = vmatprep.mubr.f32.mxu1 %v5572_v0  ;;  %5032 = vmatpush3.bf16.msra.mxu1 %v4809_v58 }
  0xb8   : > { %5025 = vmatprep.subr.bf16.mxu1 %v4813_v1  ;;  %4489 = vmatmul.mubr.f32.gmra.mrb[2].mxu0 %v293_v13 }
  0xba   : > { %435 = vmatmul.mubr.f32.gmra.mrb[8].mxu1 %v294_v14 }
  0xbb   : > { %440 = vmatprep.mubr.f32.mxu1 %v5572_v0  ;;  %5033 = vmatpush3.bf16.msra.mxu1 %v4813_v1 }
  0xbc   : > { %5026 = vmatprep.subr.bf16.mxu1 %v4817_v4 }
  0xbe   : > { %441 = vmatmul.mubr.f32.gmra.mrb[10].mxu1 %v295_v15 }
  0xbf   : > { %446 = vmatprep.mubr.f32.mxu1 %v5572_v0  ;;  %5034 = vmatpush3.bf16.msra.mxu1 %v4817_v4  ;;  %v581_v4 = vld [vmem:[#allocation8] sm:$0xff] }
  0xc0   : > { %5027 = vmatprep.subr.bf16.mxu1 %v4821_v8 }
  0xc2   : > { %447 = vmatmul.mubr.f32.gmra.mrb[12].mxu1 %v296_v16 }
  0xc3   : > { %452 = vmatprep.mubr.f32.mxu1 %v5572_v0  ;;  %5035 = vmatpush3.bf16.msra.mxu1 %v4821_v8 }
  0xc4   : > { %5028 = vmatprep.subr.bf16.mxu1 %v4825_v12 }
  0xc6   : > { %453 = vmatmul.mubr.f32.gmra.mrb[14].mxu1 %v297_v17 }
  0xc7   : > { %5036 = vmatpush3.bf16.msra.mxu1 %v4825_v12  ;;  %4491 = vmatprep.mubr.f32.mxu1 %v294_v14 }
  0xca   : > { %4492 = vmatmul.mubr.f32.vlgmr.msra.gmra.mrb[16].mxu1 %v295_v15 }
  0xcb   : > { %4494 = vmatprep.mubr.f32.mxu1 %v296_v16 }
  0xce   : > { %4495 = vmatmul.mubr.f32.gmra.mrb[18].mxu1 %v297_v17 }
 0x17d   : > { %v412_v18 = vpop.f32.mrb[0].mxu1 }
 0x17e   : > { %v5850_v19 = vmul.f32 0.35355338, %v412_v18  ;;  %v414_v20 = vpop.f32.mrb[1].mxu1 }
 0x180   : > { %4501 = vmatprep.mubr.msk.f32.mxu1 %vm583_vm0, %v5850_v19 }
 0x181   : > { %v418_v21 = vpop.f32.mrb[2].mxu1 }
 0x182   : > { %v420_v22 = vpop.f32.mrb[3].mxu1  ;;  %v5866_v29 = vmul.f32 0.35355338, %v418_v21 }
 0x183   : > { %v4829_v24 = vpack.c.bf16 %v420_v22, %v414_v20  ;;  %v5860_v25 = vpack.i.bf16 %v420_v22, %v414_v20 }
 0x185   : > { %v424_v26 = vpop.f32.mrb[4].mxu1  ;;  %4831 = vmatprep.subr.msk.bf16.mxu1 %vm5856_vm1, %v4829_v24 }
 0x186   : > { %v426_v27 = vpop.f32.mrb[5].mxu1  ;;  %4834 = vmatpush3.bf16.xpose.msk.msra.mxu1 %vm5856_vm1, %v4829_v24  ;;  %v5870_v34 = vmul.f32 0.35355338, %v424_v26 }
 0x187   : > { %v4487_v32 = vpop.f32.mrb[0].mxu0 }
 0x188   : > { %v525_v35 = vpop.f32.mrb[1].mxu0 }
 0x189   : > { %v430_v28 = vpop.f32.mrb[6].mxu1  ;;  %v5876_v37 = vpack.i.bf16 %v4487_v32, %v525_v35  ;;  %v4853_v38 = vpack.c.bf16 %v4487_v32, %v525_v35 }
 0x18a   : > { %v432_v30 = vpop.f32.mrb[7].mxu1  ;;  %v5888_v45 = vmul.f32 0.35355338, %v430_v28 }
 0x18b   : > { %v4835_v31 = vpack.c.bf16 %v432_v30, %v426_v27  ;;  %v5868_v33 = vpack.i.bf16 %v432_v30, %v426_v27  ;;  %v4490_v41 = vpop.f32.mrb[2].mxu0 }
 0x18c   : > { %v535_v42 = vpop.f32.mrb[3].mxu0 }
 0x18d   : > { %v436_v36 = vpop.f32.mrb[8].mxu1  ;;  %4502 = vmatmul.mubr.msk.f32.vlgmr.msra.gmra.mrb[20].mxu1 %vm583_vm0, %v5866_v29  ;;  %4837 = vmatprep.subr.msk.bf16.mxu1 %vm5856_vm1, %v4835_v31  ;;  %v5886_v44 = vpack.i.bf16 %v4490_v41, %v535_v42  ;;  %v4857_v2 = vpack.c.bf16 %v4490_v41, %v535_v42 }
 0x18e   : > { %v5878_v39 = vmul.f32 0.35355338, %v436_v36  ;;  %v438_v40 = vpop.f32.mrb[9].mxu1  ;;  %4840 = vmatpush3.bf16.xpose.msk.msra.mxu1 %vm5856_vm1, %v4835_v31  ;;  %4508 = vmatprep.mubr.msk.f32.mxu1 %vm583_vm0, %v5870_v34 }
 0x190   : > { %4515 = vmatprep.mubr.msk.f32.mxu0 %vm583_vm0, %v5878_v39 }
 0x191   : > { %v442_v43 = vpop.f32.mrb[10].mxu1 }
 0x192   : > { %v444_v46 = vpop.f32.mrb[11].mxu1  ;;  %v5902_v53 = vmul.f32 0.35355338, %v442_v43 }
 0x193   : > { %v4841_v47 = vpack.c.bf16 %v444_v46, %v438_v40  ;;  %v5890_v48 = vpack.i.bf16 %v444_v46, %v438_v40 }
 0x195   : > { %v448_v49 = vpop.f32.mrb[12].mxu1  ;;  %4509 = vmatmul.mubr.msk.f32.vlgmr.msra.gmra.mrb[22].mxu1 %vm583_vm0, %v5888_v45  ;;  %4843 = vmatprep.subr.msk.bf16.mxu0 %vm5856_vm1, %v4841_v47 }
 0x196   : > { %v5896_v50 = vmul.f32 0.35355338, %v448_v49  ;;  %v450_v51 = vpop.f32.mrb[13].mxu1  ;;  %4846 = vmatpush3.bf16.xpose.msk.msra.mxu0 %vm5856_vm1, %v4841_v47 }
 0x197   : > { %4854 = vmatprep.subr.bf16.mxu0 %v4853_v38 }
 0x198   : > { %4522 = vmatprep.mubr.msk.f32.mxu1 %vm583_vm0, %v5896_v50 }
 0x199   : > { %v454_v52 = vpop.f32.mrb[14].mxu1 }
 0x19a   : > { %v456_v54 = vpop.f32.mrb[15].mxu1  ;;  %v5914_v62 = vmul.f32 0.35355338, %v454_v52 }
 0x19b   : > { %v4847_v55 = vpack.c.bf16 %v456_v54, %v450_v51  ;;  %v5904_v56 = vpack.i.bf16 %v456_v54, %v450_v51 }
 0x19d   : > { %4516 = vmatmul.mubr.msk.f32.vlgmr.msra.gmra.mrb[4].mxu0 %vm583_vm0, %v5902_v53  ;;  %4849 = vmatprep.subr.msk.bf16.mxu1 %vm5856_vm1, %v4847_v55  ;;  %v4493_v57 = vpop.f32.mrb[16].mxu1 }
 0x19e   : > { %4852 = vmatpush3.bf16.xpose.msk.msra.mxu1 %vm5856_vm1, %v4847_v55  ;;  %v545_v58 = vpop.f32.mrb[17].mxu1  ;;  %4856 = vmatpush3.bf16.msra.mxu0 %v4853_v38 }
 0x19f   : > { %v5912_v59 = vpack.i.bf16 %v4493_v57, %v545_v58  ;;  %v5920_v1 = vpack.c.bf16 %v4493_v57, %v545_v58  ;;  %4858 = vmatprep.subr.bf16.mxu1 %v4857_v2 }
 0x1a1   : > { %v4496_v60 = vpop.f32.mrb[18].mxu1  ;;  %4862 = vmatprep.subr.bf16.mxu0 %v5920_v1 }
 0x1a2   : > { %v555_v61 = vpop.f32.mrb[19].mxu1 }
 0x1a3   : > { %v5916_v63 = vpack.i.bf16 %v4496_v60, %v555_v61  ;;  %v5923_v3 = vpack.c.bf16 %v4496_v60, %v555_v61 }
 0x1a5   : > { %4523 = vmatmul.mubr.msk.f32.vlgmr.msra.gmra.mrb[24].mxu1 %vm583_vm0, %v5914_v62 }
 0x1a6   : > { %4860 = vmatpush3.bf16.msra.mxu1 %v4857_v2 }
 0x1a7   : > { %4866 = vmatprep.subr.bf16.mxu1 %v5923_v3 }
 0x260   : > { %v4503_v5 = vpop.f32.mrb[20].mxu1 }
 0x261   : > { %v662_v7 = vpop.f32.mrb[21].mxu1  ;;  %v668_v9 = vadd.f32 %v4503_v5, %v582_v6 }
 0x262   : > { %v663_v8 = vadd.f32 %v662_v7, %v581_v4 }
 0x263   : > { %v936_v12 = vsel %vm932_vm2, %v668_v9, -inf }
 0x264   : > { %v933_v10 = vsel %vm932_vm2, %v663_v8, -inf }
 0x265   : > { %934 = vmax.xlane.f32.xlu0 %v933_v10 }
 0x268   : > { %v4510_v11 = vpop.f32.mrb[22].mxu1 }
 0x269   : > { %v749_v13 = vpop.f32.mrb[23].mxu1  ;;  %937 = vmax.xlane.f32.xlu0 %v936_v12  ;;  %v755_v15 = vadd.f32 %v4510_v11, %v582_v6 }
 0x26a   : > { %v750_v14 = vadd.f32 %v749_v13, %v581_v4 }
 0x26b   : > { %v942_v18 = vsel %vm932_vm2, %v755_v15, -inf }
 0x26c   : > { %v939_v16 = vsel %vm932_vm2, %v750_v14, -inf }
 0x26d   : > { %940 = vmax.xlane.f32.xlu1 %v939_v16 }
 0x270   : > { %v4517_v17 = vpop.f32.mrb[4].mxu0 }
 0x271   : > { %v842_v20 = vadd.f32 %v4517_v17, %v582_v6  ;;  %v836_v21 = vpop.f32.mrb[5].mxu0  ;;  %943 = vmax.xlane.f32.xlu1 %v942_v18 }
 0x272   : > { %v837_v22 = vadd.f32 %v836_v21, %v581_v4 }
 0x273   : > { %v948_v24 = vsel %vm932_vm2, %v842_v20, -inf }
 0x274   : > { %v945_v26 = vsel %vm932_vm2, %v837_v22, -inf }
 0x275   : > { %949 = vmax.xlane.f32.xlu1 %v948_v24  ;;  %946 = vmax.xlane.f32.xlu0 %v945_v26 }
 0x278   : > { %v4524_v27 = vpop.f32.mrb[24].mxu1 }
 0x279   : > { %v929_v28 = vadd.f32 %v4524_v27, %v582_v6  ;;  %v923_v30 = vpop.f32.mrb[25].mxu1 }
 0x27a   : > { %v924_v31 = vadd.f32 %v923_v30, %v581_v4 }
 0x27b   : > { %v954_v32 = vsel %vm932_vm2, %v929_v28, -inf }
 0x27c   : > { %955 = vmax.xlane.f32.xlu1 %v954_v32  ;;  %v951_v35 = vsel %vm932_vm2, %v924_v31, -inf }
 0x27d   : > { %952 = vmax.xlane.f32.xlu0 %v951_v35 }
 0x28d   : > { %5132 = vrot.lane.b32.xlu1 %v5868_v33, %s5573_s24 }
 0x291   : > { %1356 = vrot.lane.b32.xlu1 %v5850_v19, %s5573_s24 }
 0x293   : > { %5127 = vrot.lane.b32.xlu0 %v5860_v25, %s5573_s24 }
 0x295   : > { %5137 = vrot.lane.b32.xlu1 %v5890_v48, %s5573_s24 }
 0x2f2   : > { %v935_v36 = vpop.xlane.xlu0 %934 }
 0x2f3   : > { %v957_v38 = vsub.f32 %v663_v8, %v935_v36 }
 0x2f5   : > { %v965_v40 = vmul.f32 1.442695, %v957_v38 }
 0x2f6   : > { %v938_v41 = vpop.xlane.xlu0 %937 }
 0x2f7   : > { %5246 = vpow2.f32 %v965_v40  ;;  %v958_v42 = vsub.f32 %v668_v9, %v938_v41 }
 0x2f9   : > { %v967_v43 = vmul.f32 1.442695, %v958_v42 }
 0x2fa   : > { %v941_v46 = vpop.xlane.xlu1 %940 }
 0x2fb   : > { %5248 = vpow2.f32 %v967_v43  ;;  %v959_v47 = vsub.f32 %v750_v14, %v941_v46 }
 0x2fd   : > { %v969_v49 = vmul.f32 1.442695, %v959_v47 }
 0x2fe   : > { %v944_v51 = vpop.xlane.xlu1 %943 }
 0x2ff   : > { %5250 = vpow2.f32 %v969_v49  ;;  %v960_v52 = vsub.f32 %v755_v15, %v944_v51 }
 0x301   : > { %v5942_v54 = vpop.eup %5246  ;;  %v971_v55 = vmul.f32 1.442695, %v960_v52 }
 0x302   : > { %v950_v57 = vpop.xlane.xlu1 %949  ;;  %v947_v58 = vpop.xlane.xlu0 %946  ;;  %v981_v60 = vsel %vm932_vm2, %v5942_v54, 0.0 }
 0x303   : > { %5252 = vpow2.f32 %v971_v55  ;;  %v962_v61 = vsub.f32 %v842_v20, %v950_v57  ;;  %v961_v2 = vsub.f32 %v837_v22, %v947_v58  ;;  %982 = vadd.xlane.f32.xlu0 %v981_v60 }
 0x305   : > { %v5946_v4 = vpop.eup %5248  ;;  %v975_v5 = vmul.f32 1.442695, %v962_v61  ;;  %v973_v6 = vmul.f32 1.442695, %v961_v2 }
 0x306   : > { %v984_v7 = vsel %vm932_vm2, %v5946_v4, 0.0 }
 0x307   : > { %5254 = vpow2.f32 %v975_v5  ;;  %985 = vadd.xlane.f32.xlu1 %v984_v7 }
 0x308   : > { %5256 = vpow2.f32 %v973_v6 }
 0x309   : > { %v5950_v8 = vpop.eup %5250  ;;  %v956_v9 = vpop.xlane.xlu1 %955 }
 0x30a   : > { %v964_v10 = vsub.f32 %v929_v28, %v956_v9  ;;  %v953_v11 = vpop.xlane.xlu0 %952  ;;  %v987_v12 = vsel %vm932_vm2, %v5950_v8, 0.0 }
 0x30b   : > { %v963_v13 = vsub.f32 %v924_v31, %v953_v11  ;;  %988 = vadd.xlane.f32.xlu0 %v987_v12 }
 0x30c   : > { %v979_v14 = vmul.f32 1.442695, %v964_v10 }
 0x30d   : > { %v5954_v15 = vpop.eup %5252  ;;  %v977_v16 = vmul.f32 1.442695, %v963_v13  ;;  %v5133_v30 = vpop.permute.xlu1 %5132 }
 0x30e   : > { %5258 = vpow2.f32 %v979_v14  ;;  %v990_v17 = vsel %vm932_vm2, %v5954_v15, 0.0  ;;  %v5128_v32 = vpop.permute.xlu0 %5127  ;;  %v5135_v58 = vunpack.i.h.bf16 %v5133_v30  ;;  %v5134_v60 = vunpack.i.l.bf16 %v5133_v30 }
 0x30f   : > { %5260 = vpow2.f32 %v977_v16  ;;  %991 = vadd.xlane.f32.xlu1 %v990_v17  ;;  %v5130_v46 = vunpack.i.h.bf16 %v5128_v32  ;;  %v5129_v47 = vunpack.i.l.bf16 %v5128_v32 }
 0x310   : > { %v4875_v6 = vpack.c.bf16 %v5135_v58, %v5134_v60 }
 0x311   : > { %v5958_v18 = vpop.eup %5254  ;;  %v1357_v31 = vpop.permute.xlu1 %1356  ;;  %v4869_v55 = vpack.c.bf16 %v5130_v46, %v5129_v47 }
 0x312   : > { %v5960_v20 = vpop.eup %5256  ;;  %v996_v21 = vsel %vm932_vm2, %v5958_v18, 0.0 }
 0x313   : > { %997 = vadd.xlane.f32.xlu1 %v996_v21  ;;  %v993_v22 = vsel %vm932_vm2, %v5960_v20, 0.0 }
 0x314   : > { %994 = vadd.xlane.f32.xlu0 %v993_v22 }
 0x315   : > { %v5138_v35 = vpop.permute.xlu1 %5137 }
 0x316   : > { %v5140_v9 = vunpack.i.h.bf16 %v5138_v35 }
 0x318   : > { %v5966_v24 = vpop.eup %5258 }
 0x319   : > { %v5968_v26 = vpop.eup %5260  ;;  %v1002_v27 = vsel %vm932_vm2, %v5966_v24, 0.0 }
 0x31a   : > { %1003 = vadd.xlane.f32.xlu1 %v1002_v27  ;;  %v999_v28 = vsel %vm932_vm2, %v5968_v26, 0.0 }
 0x31b   : > { %1000 = vadd.xlane.f32.xlu0 %v999_v28 }
 0x32b   : > { %1447 = vrot.lane.b32.xlu1 %v5870_v34, %s5573_s24 }
 0x32f   : > { %1449 = vrot.lane.b32.xlu1 %v5888_v45, %s5573_s24 }
 0x331   : > { %1358 = vrot.lane.b32.xlu0 %v5866_v29, %s5573_s24 }
 0x333   : > { %1540 = vrot.lane.b32.xlu1 %v5902_v53, %s5573_s24 }
 0x335   : > { %5142 = vrot.lane.b32.xlu0 %v5904_v56, %s5573_s24 }
 0x337   : > { %1631 = vrot.lane.b32.xlu1 %v5914_v62, %s5573_s24 }
 0x339   : > { %1538 = vrot.lane.b32.xlu0 %v5878_v39, %s5573_s24 }
 0x33d   : > { %1629 = vrot.lane.b32.xlu0 %v5896_v50, %s5573_s24 }
 0x390   : > { %v983_v36 = vpop.xlane.xlu0 %982 }
 0x391   : > { %5262 = vrcp.f32 %v983_v36 }
 0x394   : > { %v986_v38 = vpop.xlane.xlu1 %985 }
 0x395   : > { %5264 = vrcp.f32 %v986_v38 }
 0x398   : > { %v989_v40 = vpop.xlane.xlu0 %988 }
 0x399   : > { %5266 = vrcp.f32 %v989_v40 }
 0x39b   : > { %v5263_v41 = vpop.eup %5262 }
 0x39c   : > { %v992_v42 = vpop.xlane.xlu1 %991  ;;  %v1013_v43 = vmul.f32 %v5263_v41, %v5942_v54  ;;  %v1355_v41 = vld [vmem:[#allocation8 + $0x18] sm:$0xff] }
 0x39d   : > { %5268 = vrcp.f32 %v992_v42 }
 0x39e   : > { %4529 = vmatprep.mubr.msk.f32.mxu0 %vm932_vm2, %v1013_v43  ;;  %v1354_v43 = vld [vmem:[#allocation8 + $0x10] sm:$0xff] }
 0x39f   : > { %v5265_v0 = vpop.eup %5264 }
 0x3a0   : > { %v998_v49 = vpop.xlane.xlu1 %997  ;;  %v1014_v51 = vmul.f32 %v5265_v0, %v5946_v4 }
 0x3a1   : > { %5270 = vrcp.f32 %v998_v49  ;;  %v995_v52 = vpop.xlane.xlu0 %994 }
 0x3a2   : > { %5272 = vrcp.f32 %v995_v52  ;;  %4530 = vmatmul.mubr.msk.f32.vlgmr.msra.gmra.mrb[6].mxu0 %vm932_vm2, %v1014_v51 }
 0x3a3   : > { %v5267_v57 = vpop.eup %5266  ;;  %4864 = vmatpush3.bf16.msra.mxu0 %v5920_v1 }
 0x3a4   : > { %4871 = vmatprep.subr.msk.bf16.mxu0 %vm5856_vm1, %v4869_v55  ;;  %v1015_v54 = vmul.f32 %v5267_v57, %v5950_v8  ;;  %v5139_v8 = vunpack.i.l.bf16 %v5138_v35 }
 0x3a6   : > { %4536 = vmatprep.mubr.msk.f32.mxu1 %vm932_vm2, %v1015_v54  ;;  %v4881_v13 = vpack.c.bf16 %v5140_v9, %v5139_v8 }
 0x3a7   : > { %v5269_v61 = vpop.eup %5268  ;;  %v1004_v2 = vpop.xlane.xlu1 %1003 }
 0x3a8   : > { %5274 = vrcp.f32 %v1004_v2  ;;  %v1001_v4 = vpop.xlane.xlu0 %1000  ;;  %v1016_v5 = vmul.f32 %v5269_v61, %v5954_v15 }
 0x3a9   : > { %5276 = vrcp.f32 %v1001_v4 }
 0x3aa   : > { %4537 = vmatmul.mubr.msk.f32.vlgmr.msra.gmra.mrb[26].mxu1 %vm932_vm2, %v1016_v5 }
 0x3ab   : > { %v5271_v1 = vpop.eup %5270  ;;  %4868 = vmatpush3.bf16.msra.mxu1 %v5923_v3  ;;  %v1448_v16 = vpop.permute.xlu1 %1447 }
 0x3ac   : > { %v5273_v7 = vpop.eup %5272  ;;  %4877 = vmatprep.subr.msk.bf16.mxu1 %vm5856_vm1, %v4875_v6  ;;  %v1359_v10 = vpop.permute.xlu0 %1358  ;;  %v1018_v11 = vmul.f32 %v5271_v1, %v5958_v18 }
 0x3ad   : > { %v1017_v12 = vmul.f32 %v5273_v7, %v5960_v20 }
 0x3af   : > { %4543 = vmatprep.mubr.msk.f32.mxu0 %vm932_vm2, %v1017_v12  ;;  %v1450_v28 = vpop.permute.xlu1 %1449 }
 0x3b0   : > { %4544 = vmatmul.mubr.msk.f32.vlgmr.msra.gmra.mrb[8].mxu0 %vm932_vm2, %v1018_v11  ;;  %v5143_v3 = vpop.permute.xlu0 %5142 }
 0x3b1   : > { %4874 = vmatpush3.bf16.xpose.msk.msra.mxu0 %vm5856_vm1, %v4869_v55  ;;  %4557 = vmatprep.mubr.msk.f32.mxu0 %vm583_vm0, %v1357_v31  ;;  %v5145_v17 = vunpack.i.h.bf16 %v5143_v3  ;;  %v5144_v18 = vunpack.i.l.bf16 %v5143_v3 }
 0x3b2   : > { %v5275_v14 = vpop.eup %5274  ;;  %4883 = vmatprep.subr.msk.bf16.mxu0 %vm5856_vm1, %v4881_v13 }
 0x3b3   : > { %v5277_v15 = vpop.eup %5276  ;;  %v1020_v21 = vmul.f32 %v5275_v14, %v5966_v24  ;;  %v4887_v22 = vpack.c.bf16 %v5145_v17, %v5144_v18  ;;  %v1541_v24 = vpop.permute.xlu1 %1540 }
 0x3b4   : > { %v1019_v20 = vmul.f32 %v5277_v15, %v5968_v26  ;;  %v1539_v27 = vpop.permute.xlu0 %1538 }
 0x3b6   : > { %4550 = vmatprep.mubr.msk.f32.mxu1 %vm932_vm2, %v1019_v20 }
 0x3b7   : > { %4551 = vmatmul.mubr.msk.f32.vlgmr.msra.gmra.mrb[28].mxu1 %vm932_vm2, %v1020_v21  ;;  %v1632_v30 = vpop.permute.xlu1 %1631 }
 0x3b8   : > { %4558 = vmatmul.mubr.msk.f32.vlgmr.msra.gmra.mrb[10].mxu0 %vm583_vm0, %v1359_v10  ;;  %4880 = vmatpush3.bf16.xpose.msk.msra.mxu1 %vm5856_vm1, %v4875_v6  ;;  %v1630_v26 = vpop.permute.xlu0 %1629 }
 0x3b9   : > { %4886 = vmatpush3.bf16.xpose.msk.msra.mxu0 %vm5856_vm1, %v4881_v13  ;;  %4571 = vmatprep.mubr.msk.f32.mxu0 %vm583_vm0, %v1539_v27 }
 0x3ba   : > { %4564 = vmatprep.mubr.msk.f32.mxu1 %vm583_vm0, %v1448_v16  ;;  %4889 = vmatprep.subr.msk.bf16.mxu1 %vm5856_vm1, %v4887_v22 }
 0x3bf   : > { %4565 = vmatmul.mubr.msk.f32.vlgmr.msra.gmra.mrb[30].mxu1 %vm583_vm0, %v1450_v28 }
 0x3c0   : > { %4572 = vmatmul.mubr.msk.f32.vlgmr.msra.gmra.mrb[12].mxu0 %vm583_vm0, %v1541_v24  ;;  %4892 = vmatpush3.bf16.xpose.msk.msra.mxu1 %vm5856_vm1, %v4887_v22 }
 0x3c1   : > { %4578 = vmatprep.mubr.msk.f32.mxu1 %vm583_vm0, %v1630_v26 }
 0x3c7   : > { %4579 = vmatmul.mubr.msk.f32.vlgmr.msra.gmra.mrb[32].mxu1 %vm583_vm0, %v1632_v30 }
 0x475   : > { %v4531_v31 = vpop.f32.mrb[6].mxu0 }
 0x476   : > { %1346 = vst.msk [vmem:[#allocation2 + $0x8] sm:$0xff] %vm583_vm0, %v4531_v31  ;;  %v1093_v32 = vpop.f32.mrb[7].mxu0 }
 0x477   : > { %1345 = vst.msk [vmem:[#allocation2] sm:$0xff] %vm583_vm0, %v1093_v32 }
 0x47d   : > { %v4538_v35 = vpop.f32.mrb[26].mxu1 }
 0x47e   : > { %1348 = vst.msk [vmem:[#allocation2 + $0x18] sm:$0xff] %vm583_vm0, %v4538_v35  ;;  %v1174_v36 = vpop.f32.mrb[27].mxu1 }
 0x47f   : > { %1347 = vst.msk [vmem:[#allocation2 + $0x10] sm:$0xff] %vm583_vm0, %v1174_v36 }
 0x483   : > { %v4545_v38 = vpop.f32.mrb[8].mxu0 }
 0x484   : > { %1350 = vst.msk [vmem:[#allocation2 + $0x28] sm:$0xff] %vm583_vm0, %v4545_v38  ;;  %v1255_v40 = vpop.f32.mrb[9].mxu0 }
 0x485   : > { %1349 = vst.msk [vmem:[#allocation2 + $0x20] sm:$0xff] %vm583_vm0, %v1255_v40 }
 0x48a   : > { %v4552_v42 = vpop.f32.mrb[28].mxu1 }
 0x48b   : > { %v4559_v46 = vpop.f32.mrb[10].mxu0  ;;  %1352 = vst.msk [vmem:[#allocation2 + $0x38] sm:$0xff] %vm583_vm0, %v4552_v42  ;;  %v1336_v47 = vpop.f32.mrb[29].mxu1 }
 0x48c   : > { %v1444_v0 = vadd.f32 %v4559_v46, %v1355_v41  ;;  %v1438_v49 = vpop.f32.mrb[11].mxu0  ;;  %1351 = vst.msk [vmem:[#allocation2 + $0x30] sm:$0xff] %vm583_vm0, %v1336_v47 }
 0x48d   : > { %v1439_v51 = vadd.f32 %v1438_v49, %v1354_v43 }
 0x48e   : > { %v1723_v52 = vsel %vm932_vm2, %v1444_v0, -inf }
 0x48f   : > { %1724 = vmax.xlane.f32.xlu1 %v1723_v52  ;;  %v1720_v55 = vsel %vm932_vm2, %v1439_v51, -inf }
 0x490   : > { %1721 = vmax.xlane.f32.xlu0 %v1720_v55 }
 0x492   : > { %v4566_v57 = vpop.f32.mrb[30].mxu1 }
 0x493   : > { %v4573_v54 = vpop.f32.mrb[12].mxu0  ;;  %v1529_v58 = vpop.f32.mrb[31].mxu1  ;;  %v1535_v4 = vadd.f32 %v4566_v57, %v1355_v41 }
 0x494   : > { %v1626_v60 = vadd.f32 %v4573_v54, %v1355_v41  ;;  %v1530_v61 = vadd.f32 %v1529_v58, %v1354_v43  ;;  %v1620_v2 = vpop.f32.mrb[13].mxu0 }
 0x495   : > { %v1621_v1 = vadd.f32 %v1620_v2, %v1354_v43  ;;  %v1729_v9 = vsel %vm932_vm2, %v1535_v4, -inf }
 0x496   : > { %v1735_v5 = vsel %vm932_vm2, %v1626_v60, -inf  ;;  %v1726_v6 = vsel %vm932_vm2, %v1530_v61, -inf }
 0x497   : > { %1736 = vmax.xlane.f32.xlu1 %v1735_v5  ;;  %1727 = vmax.xlane.f32.xlu0 %v1726_v6  ;;  %v1732_v13 = vsel %vm932_vm2, %v1621_v1, -inf }
 0x49a   : > { %v4580_v7 = vpop.f32.mrb[32].mxu1 }
 0x49b   : > { %v1717_v8 = vadd.f32 %v4580_v7, %v1355_v41  ;;  %v1711_v10 = vpop.f32.mrb[33].mxu1  ;;  %1730 = vmax.xlane.f32.xlu0 %v1729_v9 }
 0x49c   : > { %v1712_v12 = vadd.f32 %v1711_v10, %v1354_v43 }
 0x49d   : > { %v1741_v11 = vsel %vm932_vm2, %v1717_v8, -inf }
 0x49e   : > { %1742 = vmax.xlane.f32.xlu1 %v1741_v11  ;;  %v1738_v3 = vsel %vm932_vm2, %v1712_v12, -inf }
 0x49f   : > { %1733 = vmax.xlane.f32.xlu0 %v1732_v13 }
 0x4a3   : > { %1739 = vmax.xlane.f32.xlu0 %v1738_v3 }
 0x4af   : > { %5152 = vrot.lane.b32.xlu1 %v5886_v44, %s5573_s24 }
 0x4b3   : > { %5157 = vrot.lane.b32.xlu1 %v5912_v59, %s5573_s24 }
 0x4b7   : > { %5162 = vrot.lane.b32.xlu1 %v5916_v63, %s5573_s24 }
 0x4b9   : > { %5147 = vrot.lane.b32.xlu0 %v5876_v37, %s5573_s24  ;;  %s5488_s24 = scalar_lea.vmem %s6430_s28, 1024 }
 0x4ba   : > { %p5489_p10 = scmp.ne.s32.totalorder %s6430_s28, %s5488_s24 }
 0x4bb   : > { %5172 = vrot.lane.b32.xlu1 %v5868_v33, %s5574_s26 }
 0x4bc   : > { %p5490_p3 = pnand %p5489_p10, %p5759_p5 }
 0x4bd   : > { %5167 = vrot.lane.b32.xlu0 %v5860_v25, %s5574_s26 }
 0x4be   : > { %p5491_p7 = pneg %p5490_p3 }
 0x4bf   : > { %5177 = vrot.lane.b32.xlu1 %v5890_v48, %s5574_s26 }
 0x4c1   : > { %2208 = vrot.lane.b32.xlu0 %v5850_v19, %s5574_s26 }
 0x51c   : > { %v1725_v14 = vpop.xlane.xlu1 %1724 }
 0x51d   : > { %v1745_v15 = vsub.f32 %v1444_v0, %v1725_v14  ;;  %v1722_v16 = vpop.xlane.xlu0 %1721 }
 0x51e   : > { %v1744_v17 = vsub.f32 %v1439_v51, %v1722_v16 }
 0x51f   : > { %v1754_v18 = vmul.f32 1.442695, %v1745_v15 }
 0x520   : > { %v1752_v20 = vmul.f32 1.442695, %v1744_v17 }
 0x521   : > { %5278 = vpow2.f32 %v1754_v18 }
 0x522   : > { %5280 = vpow2.f32 %v1752_v20 }
 0x524   : > { %v1737_v21 = vpop.xlane.xlu1 %1736  ;;  %v1728_v22 = vpop.xlane.xlu0 %1727 }
 0x525   : > { %v1746_v27 = vsub.f32 %v1530_v61, %v1728_v22  ;;  %v1749_v28 = vsub.f32 %v1626_v60, %v1737_v21 }
 0x527   : > { %v1756_v24 = vmul.f32 1.442695, %v1746_v27  ;;  %v1762_v32 = vmul.f32 1.442695, %v1749_v28 }
 0x528   : > { %v1731_v26 = vpop.xlane.xlu0 %1730 }
 0x529   : > { %v1747_v30 = vsub.f32 %v1535_v4, %v1731_v26  ;;  %5282 = vpow2.f32 %v1756_v24 }
 0x52b   : > { %v6072_v31 = vpop.eup %5278  ;;  %v1758_v35 = vmul.f32 1.442695, %v1747_v30  ;;  %v1743_v36 = vpop.xlane.xlu1 %1742 }
 0x52c   : > { %v6074_v38 = vpop.eup %5280  ;;  %v1751_v40 = vsub.f32 %v1717_v8, %v1743_v36  ;;  %v1771_v41 = vsel %vm932_vm2, %v6072_v31, 0.0  ;;  %v1734_v42 = vpop.xlane.xlu0 %1733 }
 0x52d   : > { %5284 = vpow2.f32 %v1758_v35  ;;  %1772 = vadd.xlane.f32.xlu1 %v1771_v41  ;;  %v1748_v43 = vsub.f32 %v1621_v1, %v1734_v42  ;;  %v1768_v46 = vsel %vm932_vm2, %v6074_v38, 0.0 }
 0x52e   : > { %1769 = vadd.xlane.f32.xlu0 %v1768_v46  ;;  %5286 = vpow2.f32 %v1762_v32  ;;  %v1766_v47 = vmul.f32 1.442695, %v1751_v40 }
 0x52f   : > { %v1760_v0 = vmul.f32 1.442695, %v1748_v43  ;;  %v5153_v49 = vpop.permute.xlu1 %5152 }
 0x530   : > { %v5155_v51 = vunpack.i.h.bf16 %v5153_v49  ;;  %v5154_v52 = vunpack.i.l.bf16 %v5153_v49  ;;  %v1740_v55 = vpop.xlane.xlu0 %1739 }
 0x531   : > { %5288 = vpow2.f32 %v1760_v0  ;;  %v1750_v57 = vsub.f32 %v1712_v12, %v1740_v55 }
 0x532   : > { %v4897_v54 = vpack.c.bf16 %v5155_v51, %v5154_v52  ;;  %5290 = vpow2.f32 %v1766_v47 }
 0x533   : > { %v1764_v58 = vmul.f32 1.442695, %v1750_v57  ;;  %v5158_v60 = vpop.permute.xlu1 %5157  ;;  %v6080_v61 = vpop.eup %5282 }
 0x534   : > { %v5160_v2 = vunpack.i.h.bf16 %v5158_v60  ;;  %v5159_v4 = vunpack.i.l.bf16 %v5158_v60  ;;  %4898 = vmatprep.subr.bf16.mxu1 %v4897_v54  ;;  %v5148_v5 = vpop.permute.xlu0 %5147  ;;  %v1774_v7 = vsel %vm932_vm2, %v6080_v61, 0.0 }
 0x535   : > { %5292 = vpow2.f32 %v1764_v58  ;;  %v5150_v6 = vunpack.i.h.bf16 %v5148_v5  ;;  %v5149_v1 = vunpack.i.l.bf16 %v5148_v5  ;;  %4900 = vmatpush3.bf16.msra.mxu1 %v4897_v54  ;;  %1775 = vadd.xlane.f32.xlu0 %v1774_v7 }
 0x536   : > { %v4901_v14 = vpack.c.bf16 %v5160_v2, %v5159_v4 }
 0x537   : > { %v6084_v9 = vpop.eup %5284  ;;  %v4893_v8 = vpack.c.bf16 %v5150_v6, %v5149_v1  ;;  %v5163_v10 = vpop.permute.xlu1 %5162 }
 0x538   : > { %v5165_v11 = vunpack.i.h.bf16 %v5163_v10  ;;  %v5164_v12 = vunpack.i.l.bf16 %v5163_v10  ;;  %v1777_v13 = vsel %vm932_vm2, %v6084_v9, 0.0  ;;  %v6088_v3 = vpop.eup %5286  ;;  %v5168_v24 = vpop.permute.xlu0 %5167 }
 0x539   : > { %1778 = vadd.xlane.f32.xlu1 %v1777_v13  ;;  %4894 = vmatprep.subr.bf16.mxu0 %v4893_v8  ;;  %v1783_v17 = vsel %vm932_vm2, %v6088_v3, 0.0  ;;  %v5170_v42 = vunpack.i.h.bf16 %v5168_v24  ;;  %v5169_v43 = vunpack.i.l.bf16 %v5168_v24 }
 0x53a   : > { %v6090_v15 = vpack.c.bf16 %v5165_v11, %v5164_v12  ;;  %4896 = vmatpush3.bf16.msra.mxu0 %v4893_v8 }
 0x53b   : > { %v6092_v16 = vpop.eup %5288  ;;  %4902 = vmatprep.subr.bf16.mxu0 %v4901_v14  ;;  %v5173_v28 = vpop.permute.xlu1 %5172  ;;  %v4909_v49 = vpack.c.bf16 %v5170_v42, %v5169_v43  ;;  %v2207_v42 = vld [vmem:[#allocation8 + $0x28] sm:$0xff]  ;;  %v2206_v43 = vld [vmem:[#allocation8 + $0x20] sm:$0xff] }
 0x53c   : > { %4906 = vmatprep.subr.bf16.mxu1 %v6090_v15  ;;  %v1780_v18 = vsel %vm932_vm2, %v6092_v16, 0.0  ;;  %v6099_v20 = vpop.eup %5290  ;;  %v2209_v30 = vpop.permute.xlu0 %2208  ;;  %v5174_v58 = vunpack.i.l.bf16 %v5173_v28 }
 0x53d   : > { %1784 = vadd.xlane.f32.xlu1 %v1783_v17  ;;  %1781 = vadd.xlane.f32.xlu0 %v1780_v18  ;;  %v1789_v22 = vsel %vm932_vm2, %v6099_v20, 0.0 }
 0x53f   : > { %v6101_v21 = vpop.eup %5292  ;;  %v5178_v26 = vpop.permute.xlu1 %5177 }
 0x540   : > { %v1786_v27 = vsel %vm932_vm2, %v6101_v21, 0.0  ;;  %v5180_v7 = vunpack.i.h.bf16 %v5178_v26  ;;  %v5179_v8 = vunpack.i.l.bf16 %v5178_v26 }
 0x541   : > { %1790 = vadd.xlane.f32.xlu1 %v1789_v22  ;;  %1787 = vadd.xlane.f32.xlu0 %v1786_v27 }
 0x542   : > { %v4921_v13 = vpack.c.bf16 %v5180_v7, %v5179_v8 }
 0x552   : > { %2299 = vrot.lane.b32.xlu1 %v5870_v34, %s5574_s26 }
 0x556   : > { %2301 = vrot.lane.b32.xlu1 %v5888_v45, %s5574_s26 }
 0x557   : > { %2210 = vrot.lane.b32.xlu0 %v5866_v29, %s5574_s26 }
 0x55a   : > { %2392 = vrot.lane.b32.xlu1 %v5902_v53, %s5574_s26 }
 0x55b   : > { %5182 = vrot.lane.b32.xlu0 %v5904_v56, %s5574_s26 }
 0x55e   : > { %2483 = vrot.lane.b32.xlu1 %v5914_v62, %s5574_s26 }
 0x55f   : > { %2390 = vrot.lane.b32.xlu0 %v5878_v39, %s5574_s26 }
 0x563   : > { %2481 = vrot.lane.b32.xlu0 %v5896_v50, %s5574_s26 }
 0x5ba   : > { %v1773_v32 = vpop.xlane.xlu1 %1772 }
 0x5bb   : > { %5294 = vrcp.f32 %v1773_v32  ;;  %v1770_v35 = vpop.xlane.xlu0 %1769 }
 0x5bc   : > { %5296 = vrcp.f32 %v1770_v35 }
 0x5c2   : > { %v1776_v36 = vpop.xlane.xlu0 %1775 }
 0x5c3   : > { %5298 = vrcp.f32 %v1776_v36 }
 0x5c5   : > { %v5295_v40 = vpop.eup %5294 }
 0x5c6   : > { %v5297_v41 = vpop.eup %5296  ;;  %v1779_v46 = vpop.xlane.xlu1 %1778  ;;  %v1801_v0 = vmul.f32 %v5295_v40, %v6072_v31  ;;  %v5175_v31 = vunpack.i.h.bf16 %v5173_v28 }
 0x5c7   : > { %5300 = vrcp.f32 %v1779_v46  ;;  %v1800_v47 = vmul.f32 %v5297_v41, %v6074_v38 }
 0x5c8   : > { %v4915_v5 = vpack.c.bf16 %v5175_v31, %v5174_v58 }
 0x5c9   : > { %4585 = vmatprep.mubr.msk.f32.mxu0 %vm932_vm2, %v1800_v47 }
 0x5ca   : > { %4586 = vmatmul.mubr.msk.f32.vlgmr.msra.gmra.mrb[14].mxu0 %vm932_vm2, %v1801_v0  ;;  %v1785_v51 = vpop.xlane.xlu1 %1784  ;;  %v1782_v52 = vpop.xlane.xlu0 %1781 }
 0x5cb   : > { %4904 = vmatpush3.bf16.msra.mxu0 %v4901_v14  ;;  %5302 = vrcp.f32 %v1785_v51 }
 0x5cc   : > { %5304 = vrcp.f32 %v1782_v52  ;;  %4911 = vmatprep.subr.msk.bf16.mxu0 %vm5856_vm1, %v4909_v49 }
 0x5cd   : > { %v5299_v55 = vpop.eup %5298 }
 0x5ce   : > { %v1791_v57 = vpop.xlane.xlu1 %1790  ;;  %v1788_v54 = vpop.xlane.xlu0 %1787  ;;  %v1802_v38 = vmul.f32 %v5299_v55, %v6080_v61 }
 0x5cf   : > { %5306 = vrcp.f32 %v1791_v57 }
 0x5d0   : > { %5308 = vrcp.f32 %v1788_v54  ;;  %4592 = vmatprep.mubr.msk.f32.mxu1 %vm932_vm2, %v1802_v38 }
 0x5d1   : > { %v5301_v60 = vpop.eup %5300 }
 0x5d2   : > { %v1803_v2 = vmul.f32 %v5301_v60, %v6084_v9  ;;  %v2211_v4 = vpop.permute.xlu0 %2210  ;;  %v2300_v18 = vpop.permute.xlu1 %2299 }
 0x5d4   : > { %4593 = vmatmul.mubr.msk.f32.vlgmr.msra.gmra.mrb[34].mxu1 %vm932_vm2, %v1803_v2 }
 0x5d5   : > { %v5303_v6 = vpop.eup %5302  ;;  %4908 = vmatpush3.bf16.msra.mxu1 %v6090_v15 }
 0x5d6   : > { %v5305_v1 = vpop.eup %5304  ;;  %v1805_v61 = vmul.f32 %v5303_v6, %v6088_v3  ;;  %4917 = vmatprep.subr.msk.bf16.mxu1 %vm5856_vm1, %v4915_v5  ;;  %v5183_v10 = vpop.permute.xlu0 %5182 }
 0x5d7   : > { %v1804_v11 = vmul.f32 %v5305_v1, %v6092_v16  ;;  %v5185_v17 = vunpack.i.h.bf16 %v5183_v10  ;;  %v5184_v15 = vunpack.i.l.bf16 %v5183_v10  ;;  %v2302_v22 = vpop.permute.xlu1 %2301 }
 0x5d9   : > { %v5307_v12 = vpop.eup %5306  ;;  %4599 = vmatprep.mubr.msk.f32.mxu0 %vm932_vm2, %v1804_v11  ;;  %v4927_v16 = vpack.c.bf16 %v5185_v17, %v5184_v15 }
 0x5da   : > { %v5309_v9 = vpop.eup %5308  ;;  %v1807_v14 = vmul.f32 %v5307_v12, %v6099_v20  ;;  %4600 = vmatmul.mubr.msk.f32.vlgmr.msra.gmra.mrb[16].mxu0 %vm932_vm2, %v1805_v61  ;;  %v2391_v20 = vpop.permute.xlu0 %2390 }
 0x5db   : > { %4914 = vmatpush3.bf16.xpose.msk.msra.mxu0 %vm5856_vm1, %v4909_v49  ;;  %4613 = vmatprep.mubr.msk.f32.mxu0 %vm583_vm0, %v2209_v30  ;;  %v1806_v3 = vmul.f32 %v5309_v9, %v6101_v21  ;;  %v2393_v27 = vpop.permute.xlu1 %2392 }
 0x5dc   : > { %4923 = vmatprep.subr.msk.bf16.mxu0 %vm5856_vm1, %v4921_v13 }
 0x5dd   : > { %4606 = vmatprep.mubr.msk.f32.mxu1 %vm932_vm2, %v1806_v3 }
 0x5de   : > { %4607 = vmatmul.mubr.msk.f32.vlgmr.msra.gmra.mrb[36].mxu1 %vm932_vm2, %v1807_v14  ;;  %v2482_v21 = vpop.permute.xlu0 %2481 }
 0x5df   : > { %4920 = vmatpush3.bf16.xpose.msk.msra.mxu1 %vm5856_vm1, %v4915_v5  ;;  %4620 = vmatprep.mubr.msk.f32.mxu1 %vm583_vm0, %v2300_v18  ;;  %v2484_v28 = vpop.permute.xlu1 %2483 }
 0x5e0   : > { %4929 = vmatprep.subr.msk.bf16.mxu1 %vm5856_vm1, %v4927_v16 }
 0x5e2   : > { %4614 = vmatmul.mubr.msk.f32.vlgmr.msra.gmra.mrb[18].mxu0 %vm583_vm0, %v2211_v4 }
 0x5e3   : > { %4926 = vmatpush3.bf16.xpose.msk.msra.mxu0 %vm5856_vm1, %v4921_v13  ;;  %4627 = vmatprep.mubr.msk.f32.mxu0 %vm583_vm0, %v2391_v20 }
 0x5e6   : > { %4621 = vmatmul.mubr.msk.f32.vlgmr.msra.gmra.mrb[38].mxu1 %vm583_vm0, %v2302_v22 }
 0x5e7   : > { %4932 = vmatpush3.bf16.xpose.msk.msra.mxu1 %vm5856_vm1, %v4927_v16  ;;  %4634 = vmatprep.mubr.msk.f32.mxu1 %vm583_vm0, %v2482_v21 }
 0x5ea   : > { %4628 = vmatmul.mubr.msk.f32.vlgmr.msra.gmra.mrb[20].mxu0 %vm583_vm0, %v2393_v27 }
 0x5ee   : > { %4635 = vmatmul.mubr.msk.f32.vlgmr.msra.gmra.mrb[40].mxu1 %vm583_vm0, %v2484_v28 }
 0x69d   : > { %v6164_v24 = vpop.f32.mrb[14].mxu0 }
 0x69e   : > { %v6166_v26 = vpop.f32.mrb[15].mxu0 }
 0x6a7   : > { %v6168_v30 = vpop.f32.mrb[34].mxu1 }
 0x6a8   : > { %v6170_v32 = vpop.f32.mrb[35].mxu1 }
 0x6ad   : > { %v6172_v35 = vpop.f32.mrb[16].mxu0 }
 0x6ae   : > { %v6174_v36 = vpop.f32.mrb[17].mxu0 }
 0x6b1   : > { %v6176_v40 = vpop.f32.mrb[36].mxu1 }
 0x6b2   : > { %v6178_v41 = vpop.f32.mrb[37].mxu1 }
 0x6b5   : > { %v4615_v46 = vpop.f32.mrb[18].mxu0 }
 0x6b6   : > { %v2296_v47 = vadd.f32 %v4615_v46, %v2207_v42  ;;  %v2290_v0 = vpop.f32.mrb[19].mxu0 }
 0x6b7   : > { %v2291_v49 = vadd.f32 %v2290_v0, %v2206_v43 }
 0x6b8   : > { %v2575_v51 = vsel %vm932_vm2, %v2296_v47, -inf }
 0x6b9   : > { %v4622_v52 = vpop.f32.mrb[38].mxu1  ;;  %2576 = vmax.xlane.f32.xlu1 %v2575_v51  ;;  %v2572_v55 = vsel %vm932_vm2, %v2291_v49, -inf }
 0x6ba   : > { %v2381_v57 = vpop.f32.mrb[39].mxu1  ;;  %2573 = vmax.xlane.f32.xlu0 %v2572_v55  ;;  %v2387_v38 = vadd.f32 %v4622_v52, %v2207_v42 }
 0x6bb   : > { %v2382_v54 = vadd.f32 %v2381_v57, %v2206_v43 }
 0x6bc   : > { %v2581_v1 = vsel %vm932_vm2, %v2387_v38, -inf }
 0x6bd   : > { %v4629_v31 = vpop.f32.mrb[20].mxu0  ;;  %v2578_v58 = vsel %vm932_vm2, %v2382_v54, -inf }
 0x6be   : > { %v2478_v60 = vadd.f32 %v4629_v31, %v2207_v42  ;;  %v2472_v2 = vpop.f32.mrb[21].mxu0  ;;  %2579 = vmax.xlane.f32.xlu0 %v2578_v58 }
 0x6bf   : > { %v2473_v5 = vadd.f32 %v2472_v2, %v2206_v43 }
 0x6c0   : > { %v2587_v4 = vsel %vm932_vm2, %v2478_v60, -inf }
 0x6c1   : > { %v4636_v6 = vpop.f32.mrb[40].mxu1  ;;  %2588 = vmax.xlane.f32.xlu1 %v2587_v4  ;;  %v2584_v11 = vsel %vm932_vm2, %v2473_v5, -inf }
 0x6c2   : > { %v2569_v7 = vadd.f32 %v4636_v6, %v2207_v42  ;;  %v2563_v8 = vpop.f32.mrb[41].mxu1  ;;  %2582 = vmax.xlane.f32.xlu0 %v2581_v1 }
 0x6c3   : > { %v2564_v10 = vadd.f32 %v2563_v8, %v2206_v43 }
 0x6c4   : > { %v2593_v61 = vsel %vm932_vm2, %v2569_v7, -inf }
 0x6c5   : > { %2594 = vmax.xlane.f32.xlu1 %v2593_v61  ;;  %v2590_v12 = vsel %vm932_vm2, %v2564_v10, -inf }
 0x6c6   : > { %2585 = vmax.xlane.f32.xlu0 %v2584_v11 }
 0x6ca   : > { %2591 = vmax.xlane.f32.xlu0 %v2590_v12 }
 0x6d6   : > { %5192 = vrot.lane.b32.xlu1 %v5886_v44, %s5574_s26 }
 0x6da   : > { %5197 = vrot.lane.b32.xlu1 %v5912_v59, %s5574_s26 }
 0x6de   : > { %5202 = vrot.lane.b32.xlu1 %v5916_v63, %s5574_s26 }
 0x6e0   : > { %5187 = vrot.lane.b32.xlu0 %v5876_v37, %s5574_s26  ;;  %s5492_s26 = sshll.u32 %s5579_s22, 4  ;;  %s5493_s26 = int_to_ptr.vmem [resolvable:$false] %s5492_s26 }
 0x6e1   : > { %p5495_p12 = scmp.lt.s32.totalorder %s6430_s28, %s5493_s26 }
 0x6e2   : > { %5212 = vrot.lane.b32.xlu1 %v5868_v33, %s5575_s14 }
 0x6e4   : > { %5207 = vrot.lane.b32.xlu0 %v5860_v25, %s5575_s14 }
 0x6e6   : > { %3052 = vrot.lane.b32.xlu1 %v5850_v19, %s5575_s14 }
 0x6e8   : > { %5217 = vrot.lane.b32.xlu0 %v5890_v48, %s5575_s14 }
 0x746   : > { %v2577_v9 = vpop.xlane.xlu1 %2576 }
 0x747   : > { %v2597_v13 = vsub.f32 %v2296_v47, %v2577_v9  ;;  %v2574_v14 = vpop.xlane.xlu0 %2573 }
 0x748   : > { %v2596_v17 = vsub.f32 %v2291_v49, %v2574_v14 }
 0x749   : > { %v2606_v15 = vmul.f32 1.442695, %v2597_v13 }
 0x74a   : > { %v2604_v18 = vmul.f32 1.442695, %v2596_v17 }
 0x74b   : > { %5310 = vpow2.f32 %v2606_v15  ;;  %v2580_v3 = vpop.xlane.xlu0 %2579 }
 0x74c   : > { %5312 = vpow2.f32 %v2604_v18  ;;  %v2598_v16 = vsub.f32 %v2382_v54, %v2580_v3 }
 0x74e   : > { %v2608_v33 = vmul.f32 1.442695, %v2598_v16  ;;  %v2589_v20 = vpop.xlane.xlu1 %2588 }
 0x74f   : > { %v2601_v22 = vsub.f32 %v2478_v60, %v2589_v20  ;;  %v2583_v25 = vpop.xlane.xlu0 %2582 }
 0x750   : > { %5314 = vpow2.f32 %v2608_v33  ;;  %v2599_v21 = vsub.f32 %v2387_v38, %v2583_v25 }
 0x751   : > { %v2614_v19 = vmul.f32 1.442695, %v2601_v22 }
 0x752   : > { %v2610_v27 = vmul.f32 1.442695, %v2599_v21  ;;  %v2595_v28 = vpop.xlane.xlu1 %2594 }
 0x753   : > { %v2603_v48 = vsub.f32 %v2569_v7, %v2595_v28  ;;  %v2586_v42 = vpop.xlane.xlu0 %2585 }
 0x754   : > { %5316 = vpow2.f32 %v2610_v27  ;;  %v2600_v43 = vsub.f32 %v2473_v5, %v2586_v42 }
 0x755   : > { %v6204_v46 = vpop.eup %5310  ;;  %5318 = vpow2.f32 %v2614_v19  ;;  %v2618_v0 = vmul.f32 1.442695, %v2603_v48 }
 0x756   : > { %v6206_v47 = vpop.eup %5312  ;;  %v2612_v49 = vmul.f32 1.442695, %v2600_v43  ;;  %v5193_v51 = vpop.permute.xlu1 %5192  ;;  %v2623_v52 = vsel %vm932_vm2, %v6204_v46, 0.0 }
 0x757   : > { %v5195_v55 = vunpack.i.h.bf16 %v5193_v51  ;;  %v5194_v57 = vunpack.i.l.bf16 %v5193_v51  ;;  %2624 = vadd.xlane.f32.xlu1 %v2623_v52  ;;  %v2592_v54 = vpop.xlane.xlu0 %2591  ;;  %v2620_v38 = vsel %vm932_vm2, %v6206_v47, 0.0 }
 0x758   : > { %5320 = vpow2.f32 %v2612_v49  ;;  %v2602_v31 = vsub.f32 %v2564_v10, %v2592_v54  ;;  %2621 = vadd.xlane.f32.xlu0 %v2620_v38 }
 0x759   : > { %v4937_v58 = vpack.c.bf16 %v5195_v55, %v5194_v57  ;;  %5322 = vpow2.f32 %v2618_v0 }
 0x75a   : > { %v6212_v60 = vpop.eup %5314  ;;  %v2616_v2 = vmul.f32 1.442695, %v2602_v31  ;;  %v5198_v4 = vpop.permute.xlu1 %5197 }
 0x75b   : > { %v5200_v5 = vunpack.i.h.bf16 %v5198_v4  ;;  %4938 = vmatprep.subr.bf16.mxu1 %v4937_v58  ;;  %v5188_v6 = vpop.permute.xlu0 %5187  ;;  %v2626_v1 = vsel %vm932_vm2, %v6212_v60, 0.0  ;;  %v5199_v7 = vunpack.i.l.bf16 %v5198_v4 }
 0x75c   : > { %5324 = vpow2.f32 %v2616_v2  ;;  %v5190_v8 = vunpack.i.h.bf16 %v5188_v6  ;;  %v5189_v61 = vunpack.i.l.bf16 %v5188_v6  ;;  %4940 = vmatpush3.bf16.msra.mxu1 %v4937_v58  ;;  %2627 = vadd.xlane.f32.xlu0 %v2626_v1 }
 0x75d   : > { %v4941_v15 = vpack.c.bf16 %v5200_v5, %v5199_v7 }
 0x75e   : > { %v6216_v10 = vpop.eup %5316  ;;  %v4933_v11 = vpack.c.bf16 %v5190_v8, %v5189_v61  ;;  %v5203_v12 = vpop.permute.xlu1 %5202 }
 0x75f   : > { %v5205_v9 = vunpack.i.h.bf16 %v5203_v12  ;;  %v5204_v13 = vunpack.i.l.bf16 %v5203_v12  ;;  %v2629_v14 = vsel %vm932_vm2, %v6216_v10, 0.0  ;;  %v6220_v17 = vpop.eup %5318 }
 0x760   : > { %2630 = vadd.xlane.f32.xlu1 %v2629_v14  ;;  %4934 = vmatprep.subr.bf16.mxu0 %v4933_v11  ;;  %v2635_v16 = vsel %vm932_vm2, %v6220_v17, 0.0 }
 0x761   : > { %v6222_v18 = vpack.c.bf16 %v5205_v9, %v5204_v13  ;;  %4936 = vmatpush3.bf16.msra.mxu0 %v4933_v11 }
 0x762   : > { %v6224_v3 = vpop.eup %5320  ;;  %4942 = vmatprep.subr.bf16.mxu0 %v4941_v15 }
 0x763   : > { %4946 = vmatprep.subr.bf16.mxu1 %v6222_v18  ;;  %v2632_v33 = vsel %vm932_vm2, %v6224_v3, 0.0  ;;  %v6231_v20 = vpop.eup %5322 }
 0x764   : > { %2636 = vadd.xlane.f32.xlu1 %v2635_v16  ;;  %2633 = vadd.xlane.f32.xlu0 %v2632_v33  ;;  %v2641_v25 = vsel %vm932_vm2, %v6231_v20, 0.0 }
 0x766   : > { %v6233_v22 = vpop.eup %5324 }
 0x767   : > { %v2638_v21 = vsel %vm932_vm2, %v6233_v22, 0.0 }
 0x768   : > { %2642 = vadd.xlane.f32.xlu1 %v2641_v25  ;;  %2639 = vadd.xlane.f32.xlu0 %v2638_v21 }
 0x779   : > { %5222 = vrot.lane.b32.xlu1 %v5904_v56, %s5575_s14  ;;  %v5213_v56 = vpop.permute.xlu1 %5212 }
 0x77a   : > { %v5214_v38 = vunpack.i.l.bf16 %v5213_v56 }
 0x77d   : > { %3145 = vrot.lane.b32.xlu1 %v5888_v45, %s5575_s14  ;;  %v5208_v45 = vpop.permute.xlu0 %5207  ;;  %v3053_v19 = vpop.permute.xlu1 %3052 }
 0x77e   : > { %3054 = vrot.lane.b32.xlu0 %v5866_v29, %s5575_s14  ;;  %v5210_v42 = vunpack.i.h.bf16 %v5208_v45  ;;  %v5209_v43 = vunpack.i.l.bf16 %v5208_v45 }
 0x780   : > { %v4949_v52 = vpack.c.bf16 %v5210_v42, %v5209_v43 }
 0x781   : > { %3236 = vrot.lane.b32.xlu1 %v5902_v53, %s5575_s14  ;;  %v5218_v27 = vpop.permute.xlu0 %5217 }
 0x782   : > { %3143 = vrot.lane.b32.xlu0 %v5870_v34, %s5575_s14  ;;  %v5220_v5 = vunpack.i.h.bf16 %v5218_v27  ;;  %v5219_v6 = vunpack.i.l.bf16 %v5218_v27 }
 0x784   : > { %v4961_v11 = vpack.c.bf16 %v5220_v5, %v5219_v6 }
 0x785   : > { %3327 = vrot.lane.b32.xlu1 %v5914_v62, %s5575_s14 }
 0x786   : > { %3234 = vrot.lane.b32.xlu0 %v5878_v39, %s5575_s14 }
 0x78a   : > { %3325 = vrot.lane.b32.xlu0 %v5896_v50, %s5575_s14 }
 0x7e4   : > { %v2625_v29 = vpop.xlane.xlu1 %2624 }
 0x7e5   : > { %5326 = vrcp.f32 %v2625_v29  ;;  %v2622_v28 = vpop.xlane.xlu0 %2621  ;;  %v3051_v29 = vld [vmem:[#allocation8 + $0x38] sm:$0xff] }
 0x7e6   : > { %5328 = vrcp.f32 %v2622_v28  ;;  %v3050_v28 = vld [vmem:[#allocation8 + $0x30] sm:$0xff] }
 0x7e9   : > { %v2628_v53 = vpop.xlane.xlu0 %2627 }
 0x7ea   : > { %5330 = vrcp.f32 %v2628_v53 }
 0x7ed   : > { %v2631_v34 = vpop.xlane.xlu1 %2630 }
 0x7ee   : > { %5332 = vrcp.f32 %v2631_v34 }
 0x7ef   : > { %v5327_v48 = vpop.eup %5326 }
 0x7f0   : > { %v5329_v62 = vpop.eup %5328  ;;  %v2653_v49 = vmul.f32 %v5327_v48, %v6204_v46 }
 0x7f1   : > { %v2637_v39 = vpop.xlane.xlu1 %2636  ;;  %v2634_v0 = vpop.xlane.xlu0 %2633  ;;  %v2652_v50 = vmul.f32 %v5329_v62, %v6206_v47  ;;  %v5215_v47 = vunpack.i.h.bf16 %v5213_v56 }
 0x7f2   : > { %5334 = vrcp.f32 %v2637_v39 }
 0x7f3   : > { %5336 = vrcp.f32 %v2634_v0  ;;  %4641 = vmatprep.mubr.msk.f32.mxu0 %vm932_vm2, %v2652_v50  ;;  %v4955_v58 = vpack.c.bf16 %v5215_v47, %v5214_v38 }
 0x7f4   : > { %v5331_v51 = vpop.eup %5330  ;;  %4642 = vmatmul.mubr.msk.f32.vlgmr.msra.gmra.mrb[22].mxu0 %vm932_vm2, %v2653_v49 }
 0x7f5   : > { %4944 = vmatpush3.bf16.msra.mxu0 %v4941_v15  ;;  %v2643_v55 = vpop.xlane.xlu1 %2642  ;;  %v2640_v57 = vpop.xlane.xlu0 %2639  ;;  %v2654_v54 = vmul.f32 %v5331_v51, %v6212_v60 }
 0x7f6   : > { %5338 = vrcp.f32 %v2643_v55  ;;  %4951 = vmatprep.subr.msk.bf16.mxu0 %vm5856_vm1, %v4949_v52 }
 0x7f7   : > { %5340 = vrcp.f32 %v2640_v57  ;;  %4648 = vmatprep.mubr.msk.f32.mxu1 %vm932_vm2, %v2654_v54 }
 0x7f8   : > { %v5333_v46 = vpop.eup %5332 }
 0x7f9   : > { %v2655_v31 = vmul.f32 %v5333_v46, %v6216_v10  ;;  %v3055_v2 = vpop.permute.xlu0 %3054  ;;  %v5223_v7 = vpop.permute.xlu1 %5222 }
 0x7fa   : > { %v5225_v9 = vunpack.i.h.bf16 %v5223_v7  ;;  %v5224_v13 = vunpack.i.l.bf16 %v5223_v7 }
 0x7fb   : > { %4649 = vmatmul.mubr.msk.f32.vlgmr.msra.gmra.mrb[42].mxu1 %vm932_vm2, %v2655_v31 }
 0x7fc   : > { %v5335_v4 = vpop.eup %5334  ;;  %4948 = vmatpush3.bf16.msra.mxu1 %v6222_v18  ;;  %v4967_v15 = vpack.c.bf16 %v5225_v9, %v5224_v13 }
 0x7fd   : > { %v5337_v60 = vpop.eup %5336  ;;  %v2657_v1 = vmul.f32 %v5335_v4, %v6220_v17  ;;  %4957 = vmatprep.subr.msk.bf16.mxu1 %vm5856_vm1, %v4955_v58  ;;  %v3144_v14 = vpop.permute.xlu0 %3143 }
 0x7fe   : > { %v2656_v8 = vmul.f32 %v5337_v60, %v6224_v3  ;;  %v3146_v3 = vpop.permute.xlu1 %3145 }
 0x800   : > { %v5339_v61 = vpop.eup %5338  ;;  %4655 = vmatprep.mubr.msk.f32.mxu0 %vm932_vm2, %v2656_v8 }
 0x801   : > { %v5341_v10 = vpop.eup %5340  ;;  %v2659_v12 = vmul.f32 %v5339_v61, %v6231_v20  ;;  %4656 = vmatmul.mubr.msk.f32.vlgmr.msra.gmra.mrb[24].mxu0 %vm932_vm2, %v2657_v1  ;;  %v3235_v18 = vpop.permute.xlu0 %3234 }
 0x802   : > { %4954 = vmatpush3.bf16.xpose.msk.msra.mxu0 %vm5856_vm1, %v4949_v52  ;;  %4669 = vmatprep.mubr.msk.f32.mxu0 %vm583_vm0, %v3053_v19  ;;  %v2658_v17 = vmul.f32 %v5341_v10, %v6233_v22  ;;  %v3237_v33 = vpop.permute.xlu1 %3236 }
 0x803   : > { %4963 = vmatprep.subr.msk.bf16.mxu0 %vm5856_vm1, %v4961_v11 }
 0x804   : > { %4662 = vmatprep.mubr.msk.f32.mxu1 %vm932_vm2, %v2658_v17 }
 0x805   : > { %4663 = vmatmul.mubr.msk.f32.vlgmr.msra.gmra.mrb[44].mxu1 %vm932_vm2, %v2659_v12  ;;  %v3326_v16 = vpop.permute.xlu0 %3325 }
 0x806   : > { %4960 = vmatpush3.bf16.xpose.msk.msra.mxu1 %vm5856_vm1, %v4955_v58  ;;  %4676 = vmatprep.mubr.msk.f32.mxu1 %vm583_vm0, %v3144_v14  ;;  %v3328_v20 = vpop.permute.xlu1 %3327 }
 0x807   : > { %4969 = vmatprep.subr.msk.bf16.mxu1 %vm5856_vm1, %v4967_v15 }
 0x809   : > { %4670 = vmatmul.mubr.msk.f32.vlgmr.msra.gmra.mrb[26].mxu0 %vm583_vm0, %v3055_v2 }
 0x80a   : > { %4966 = vmatpush3.bf16.xpose.msk.msra.mxu0 %vm5856_vm1, %v4961_v11  ;;  %4683 = vmatprep.mubr.msk.f32.mxu0 %vm583_vm0, %v3235_v18 }
 0x80d   : > { %4677 = vmatmul.mubr.msk.f32.vlgmr.msra.gmra.mrb[46].mxu1 %vm583_vm0, %v3146_v3 }
 0x80e   : > { %4972 = vmatpush3.bf16.xpose.msk.msra.mxu1 %vm5856_vm1, %v4967_v15  ;;  %4690 = vmatprep.mubr.msk.f32.mxu1 %vm583_vm0, %v3326_v16 }
 0x811   : > { %4684 = vmatmul.mubr.msk.f32.vlgmr.msra.gmra.mrb[28].mxu0 %vm583_vm0, %v3237_v33 }
 0x815   : > { %4691 = vmatmul.mubr.msk.f32.vlgmr.msra.gmra.mrb[48].mxu1 %vm583_vm0, %v3328_v20 }
 0x8c7   : > { %v6296_v22 = vpop.f32.mrb[22].mxu0 }
 0x8c8   : > { %v6298_v25 = vpop.f32.mrb[23].mxu0 }
 0x8ce   : > { %v6300_v21 = vpop.f32.mrb[42].mxu1 }
 0x8cf   : > { %v6302_v56 = vpop.f32.mrb[43].mxu1 }
 0x8d4   : > { %v6304_v45 = vpop.f32.mrb[24].mxu0 }
 0x8d5   : > { %v6306_v19 = vpop.f32.mrb[25].mxu0 }
 0x8d8   : > { %v6308_v23 = vpop.f32.mrb[44].mxu1 }
 0x8d9   : > { %v6310_v27 = vpop.f32.mrb[45].mxu1 }
 0x8dc   : > { %v4671_v53 = vpop.f32.mrb[26].mxu0 }
 0x8dd   : > { %v3140_v34 = vadd.f32 %v4671_v53, %v3051_v29  ;;  %v3134_v48 = vpop.f32.mrb[27].mxu0 }
 0x8de   : > { %v3135_v62 = vadd.f32 %v3134_v48, %v3050_v28 }
 0x8df   : > { %v3419_v42 = vsel %vm932_vm2, %v3140_v34, -inf }
 0x8e0   : > { %v4678_v43 = vpop.f32.mrb[46].mxu1  ;;  %3420 = vmax.xlane.f32.xlu1 %v3419_v42  ;;  %v3416_v39 = vsel %vm932_vm2, %v3135_v62, -inf }
 0x8e1   : > { %v3231_v0 = vadd.f32 %v4678_v43, %v3051_v29  ;;  %v3225_v50 = vpop.f32.mrb[47].mxu1  ;;  %3417 = vmax.xlane.f32.xlu0 %v3416_v39 }
 0x8e2   : > { %v3226_v51 = vadd.f32 %v3225_v50, %v3050_v28 }
 0x8e3   : > { %v3425_v49 = vsel %vm932_vm2, %v3231_v0, -inf }
 0x8e4   : > { %v4685_v52 = vpop.f32.mrb[28].mxu0  ;;  %v3422_v46 = vsel %vm932_vm2, %v3226_v51, -inf }
 0x8e5   : > { %v3322_v55 = vadd.f32 %v4685_v52, %v3051_v29  ;;  %v3316_v57 = vpop.f32.mrb[29].mxu0  ;;  %3426 = vmax.xlane.f32.xlu0 %v3425_v49 }
 0x8e6   : > { %v3317_v47 = vadd.f32 %v3316_v57, %v3050_v28 }
 0x8e7   : > { %v3431_v54 = vsel %vm932_vm2, %v3322_v55, -inf }
 0x8e8   : > { %v4692_v38 = vpop.f32.mrb[48].mxu1  ;;  %3432 = vmax.xlane.f32.xlu1 %v3431_v54  ;;  %v3428_v60 = vsel %vm932_vm2, %v3317_v47, -inf }
 0x8e9   : > { %v3413_v31 = vadd.f32 %v4692_v38, %v3051_v29  ;;  %v3407_v58 = vpop.f32.mrb[49].mxu1  ;;  %3423 = vmax.xlane.f32.xlu0 %v3422_v46 }
 0x8ea   : > { %v3408_v4 = vadd.f32 %v3407_v58, %v3050_v28 }
 0x8eb   : > { %v3437_v2 = vsel %vm932_vm2, %v3413_v31, -inf }
 0x8ec   : > { %3438 = vmax.xlane.f32.xlu1 %v3437_v2  ;;  %v3434_v5 = vsel %vm932_vm2, %v3408_v4, -inf }
 0x8ed   : > { %3429 = vmax.xlane.f32.xlu0 %v3428_v60 }
 0x8f1   : > { %3435 = vmax.xlane.f32.xlu0 %v3434_v5 }
 0x96d   : > { %v3421_v6 = vpop.xlane.xlu1 %3420 }
 0x96e   : > { %v3441_v1 = vsub.f32 %v3140_v34, %v3421_v6  ;;  %v3418_v7 = vpop.xlane.xlu0 %3417 }
 0x96f   : > { %v3440_v8 = vsub.f32 %v3135_v62, %v3418_v7 }
 0x970   : > { %v3450_v61 = vmul.f32 1.442695, %v3441_v1 }
 0x971   : > { %v3448_v10 = vmul.f32 1.442695, %v3440_v8 }
 0x972   : > { %5342 = vpow2.f32 %v3450_v61  ;;  %v3427_v11 = vpop.xlane.xlu0 %3426 }
 0x973   : > { %5344 = vpow2.f32 %v3448_v10  ;;  %v3443_v12 = vsub.f32 %v3231_v0, %v3427_v11 }
 0x975   : > { %v3454_v9 = vmul.f32 1.442695, %v3443_v12  ;;  %v3433_v13 = vpop.xlane.xlu1 %3432 }
 0x976   : > { %v3445_v14 = vsub.f32 %v3322_v55, %v3433_v13  ;;  %v3424_v17 = vpop.xlane.xlu0 %3423 }
 0x977   : > { %5346 = vpow2.f32 %v3454_v9  ;;  %v3442_v15 = vsub.f32 %v3226_v51, %v3424_v17 }
 0x978   : > { %v3458_v18 = vmul.f32 1.442695, %v3445_v14 }
 0x979   : > { %v3452_v3 = vmul.f32 1.442695, %v3442_v15  ;;  %v3439_v16 = vpop.xlane.xlu1 %3438 }
 0x97a   : > { %5348 = vpow2.f32 %v3458_v18  ;;  %v3447_v33 = vsub.f32 %v3413_v31, %v3439_v16  ;;  %v3430_v20 = vpop.xlane.xlu0 %3429 }
 0x97b   : > { %5350 = vpow2.f32 %v3452_v3  ;;  %v3444_v29 = vsub.f32 %v3317_v47, %v3430_v20 }
 0x97c   : > { %v6320_v28 = vpop.eup %5342  ;;  %v3462_v53 = vmul.f32 1.442695, %v3447_v33 }
 0x97d   : > { %v6322_v34 = vpop.eup %5344  ;;  %v3456_v48 = vmul.f32 1.442695, %v3444_v29  ;;  %v3467_v62 = vsel %vm932_vm2, %v6320_v28, 0.0 }
 0x97e   : > { %5352 = vpow2.f32 %v3462_v53  ;;  %3468 = vadd.xlane.f32.xlu1 %v3467_v62  ;;  %v3436_v42 = vpop.xlane.xlu0 %3435  ;;  %v3464_v43 = vsel %vm932_vm2, %v6322_v34, 0.0 }
 0x97f   : > { %5354 = vpow2.f32 %v3456_v48  ;;  %v3446_v39 = vsub.f32 %v3408_v4, %v3436_v42  ;;  %3465 = vadd.xlane.f32.xlu0 %v3464_v43 }
 0x981   : > { %v6328_v0 = vpop.eup %5346  ;;  %v3460_v50 = vmul.f32 1.442695, %v3446_v39 }
 0x982   : > { %v3473_v49 = vsel %vm932_vm2, %v6328_v0, 0.0 }
 0x983   : > { %5356 = vpow2.f32 %v3460_v50  ;;  %3474 = vadd.xlane.f32.xlu1 %v3473_v49 }
 0x984   : > { %v6332_v51 = vpop.eup %5348 }
 0x985   : > { %v6334_v52 = vpop.eup %5350  ;;  %v3479_v55 = vsel %vm932_vm2, %v6332_v51, 0.0 }
 0x986   : > { %v3470_v57 = vsel %vm932_vm2, %v6334_v52, 0.0 }
 0x987   : > { %3480 = vadd.xlane.f32.xlu1 %v3479_v55  ;;  %3471 = vadd.xlane.f32.xlu0 %v3470_v57  ;;  %v3901_v55 = vld [vmem:[#allocation9] sm:$0xff]  ;;  %v3902_v57 = vld [vmem:[#allocation9 + $0x8] sm:$0xff] }
 0x988   : > { %v6340_v54 = vpop.eup %5352 }
 0x989   : > { %v6342_v47 = vpop.eup %5354  ;;  %v3485_v38 = vsel %vm932_vm2, %v6340_v54, 0.0 }
 0x98a   : > { %v3476_v46 = vsel %vm932_vm2, %v6342_v47, 0.0 }
 0x98b   : > { %3486 = vadd.xlane.f32.xlu1 %v3485_v38  ;;  %3477 = vadd.xlane.f32.xlu0 %v3476_v46  ;;  %v3904_v38 = vld [vmem:[#allocation9 + $0x18] sm:$0xff] }
 0x98d   : > { %v6348_v31 = vpop.eup %5356 }
 0x98e   : > { %v3482_v58 = vsel %vm932_vm2, %v6348_v31, 0.0 }
 0x98f   : > { %3483 = vadd.xlane.f32.xlu0 %v3482_v58  ;;  %v3906_v58 = vld [vmem:[#allocation9 + $0x28] sm:$0xff] }
 0x99c   : > { %5232 = vrot.lane.b32.xlu1 %v5886_v44, %s5575_s14 }
 0x9a0   : > { %5237 = vrot.lane.b32.xlu1 %v5912_v59, %s5575_s14 }
 0x9a4   : > { %5242 = vrot.lane.b32.xlu1 %v5916_v63, %s5575_s14 }
 0x9a5   : > { %5227 = vrot.lane.b32.xlu0 %v5876_v37, %s5575_s14  ;;  %s5494_s14 = scalar_lea.vmem %s5493_s26, 2048 }
 0x9a6   : > { %p5496_p2 = scmp.lt.s32.totalorder %s5494_s14, %s5488_s24 }
 0x9a8   : > { %2174 = vrot.lane.b32.xlu1 %v6164_v24, %s5576_s15  ;;  %p5497_p1 = por %p5496_p2, %p5495_p12 }
 0x9a9   : > { %2172 = vrot.lane.b32.xlu0 %v6166_v26, %s5576_s15 }
 0x9aa   : > { %p5498_p4 = pnand %p5497_p1, %p5491_p7 }
 0x9ac   : > { %3018 = vrot.lane.b32.xlu1 %v6296_v22, %s5577_s27 }
 0x9ad   : > { %3016 = vrot.lane.b32.xlu0 %v6298_v25, %s5577_s27 }
 0x9b0   : > { %2178 = vrot.lane.b32.xlu1 %v6168_v30, %s5576_s15 }
 0x9b1   : > { %2176 = vrot.lane.b32.xlu0 %v6170_v32, %s5576_s15 }
 0x9b4   : > { %3022 = vrot.lane.b32.xlu1 %v6300_v21, %s5577_s27 }
 0x9b5   : > { %3020 = vrot.lane.b32.xlu0 %v6302_v56, %s5577_s27 }
 0x9b8   : > { %2182 = vrot.lane.b32.xlu1 %v6172_v35, %s5576_s15 }
 0x9b9   : > { %2180 = vrot.lane.b32.xlu0 %v6174_v36, %s5576_s15 }
 0x9bc   : > { %3026 = vrot.lane.b32.xlu1 %v6304_v45, %s5577_s27 }
 0x9bd   : > { %3024 = vrot.lane.b32.xlu0 %v6306_v19, %s5577_s27 }
 0x9c0   : > { %2186 = vrot.lane.b32.xlu1 %v6176_v40, %s5576_s15 }
 0x9c1   : > { %2184 = vrot.lane.b32.xlu0 %v6178_v41, %s5576_s15 }
 0x9c4   : > { %3030 = vrot.lane.b32.xlu1 %v6308_v23, %s5577_s27 }
 0x9c5   : > { %3028 = vrot.lane.b32.xlu0 %v6310_v27, %s5577_s27 }
 0xa0b   : > { %v3469_v37 = vpop.xlane.xlu1 %3468 }
 0xa0c   : > { %v3466_v44 = vpop.xlane.xlu0 %3465 }
 0xa0d   : > { %5358 = vrcp.f32 %v3466_v44  ;;  %v3907_v44 = vld [vmem:[#allocation9 + $0x30] sm:$0xff] }
 0xa10   : > { %v3475_v59 = vpop.xlane.xlu1 %3474 }
 0xa11   : > { %5360 = vrcp.f32 %v3475_v59  ;;  %v3908_v59 = vld [vmem:[#allocation9 + $0x38] sm:$0xff] }
 0xa14   : > { %v3481_v63 = vpop.xlane.xlu1 %3480  ;;  %v3472_v24 = vpop.xlane.xlu0 %3471 }
 0xa15   : > { %5362 = vrcp.f32 %v3472_v24  ;;  %v3909_v24 = vld [vmem:[#allocation9 + $0x40] sm:$0xff] }
 0xa16   : > { %5364 = vrcp.f32 %v3469_v37 }
 0xa17   : > { %v5359_v26 = vpop.eup %5358 }
 0xa18   : > { %v3487_v30 = vpop.xlane.xlu1 %3486  ;;  %v3478_v32 = vpop.xlane.xlu0 %3477  ;;  %v3496_v35 = vmul.f32 %v5359_v26, %v6322_v34  ;;  %v3910_v26 = vld [vmem:[#allocation9 + $0x48] sm:$0xff] }
 0xa19   : > { %5366 = vrcp.f32 %v3478_v32  ;;  %v3911_v32 = vld [vmem:[#allocation9 + $0x50] sm:$0xff] }
 0xa1a   : > { %4697 = vmatprep.mubr.msk.f32.mxu0 %vm932_vm2, %v3496_v35  ;;  %v3912_v35 = vld [vmem:[#allocation9 + $0x58] sm:$0xff] }
 0xa1b   : > { %v5361_v25 = vpop.eup %5360 }
 0xa1c   : > { %v5233_v36 = vpop.permute.xlu1 %5232  ;;  %v3484_v40 = vpop.xlane.xlu0 %3483  ;;  %v3499_v5 = vmul.f32 %v5361_v25, %v6328_v0  ;;  %v3915_v25 = vld [vmem:[#allocation9 + $0x70] sm:$0xff] }
 0xa1d   : > { %v5235_v41 = vunpack.i.h.bf16 %v5233_v36  ;;  %v5234_v22 = vunpack.i.l.bf16 %v5233_v36  ;;  %5368 = vrcp.f32 %v3484_v40  ;;  %v5009_v36 = vpack.c.bf16 %v3912_v35, %v3911_v32  ;;  %v3913_v40 = vld [vmem:[#allocation9 + $0x60] sm:$0xff] }
 0xa1e   : > { %5370 = vrcp.f32 %v3481_v63  ;;  %v5001_v63 = vpack.c.bf16 %v3908_v59, %v3907_v44 }
 0xa1f   : > { %5372 = vrcp.f32 %v3487_v30  ;;  %v4977_v21 = vpack.c.bf16 %v5235_v41, %v5234_v22  ;;  %v5363_v56 = vpop.eup %5362  ;;  %v5005_v30 = vpack.c.bf16 %v3910_v26, %v3909_v24  ;;  %v3914_v41 = vld [vmem:[#allocation9 + $0x68] sm:$0xff] }
 0xa20   : > { %v5238_v45 = vpop.permute.xlu1 %5237  ;;  %v5228_v19 = vpop.permute.xlu0 %5227  ;;  %v3498_v60 = vmul.f32 %v5363_v56, %v6334_v52  ;;  %v5013_v22 = vpack.c.bf16 %v3914_v41, %v3913_v40 }
 0xa21   : > { %v5240_v23 = vunpack.i.h.bf16 %v5238_v45  ;;  %v5239_v27 = vunpack.i.l.bf16 %v5238_v45  ;;  %v5230_v2 = vunpack.i.h.bf16 %v5228_v19  ;;  %v5229_v4 = vunpack.i.l.bf16 %v5228_v19  ;;  %4978 = vmatprep.subr.bf16.mxu1 %v4977_v21  ;;  %v5365_v1 = vpop.eup %5364 }
 0xa22   : > { %4980 = vmatpush3.bf16.msra.mxu1 %v4977_v21  ;;  %4704 = vmatprep.mubr.msk.f32.mxu1 %vm932_vm2, %v3498_v60  ;;  %v3497_v13 = vmul.f32 %v5365_v1, %v6320_v28  ;;  %v3916_v21 = vld [vmem:[#allocation9 + $0x78] sm:$0xff] }
 0xa23   : > { %v4973_v6 = vpack.c.bf16 %v5230_v2, %v5229_v4  ;;  %v5367_v61 = vpop.eup %5366  ;;  %v4981_v10 = vpack.c.bf16 %v5240_v23, %v5239_v27  ;;  %v5017_v56 = vpack.c.bf16 %v3916_v21, %v3915_v25 }
 0xa24   : > { %v5243_v7 = vpop.permute.xlu1 %5242  ;;  %v2173_v8 = vpop.permute.xlu0 %2172  ;;  %v3500_v3 = vmul.f32 %v5367_v61, %v6342_v47  ;;  %v4989_v47 = vpack.c.bf16 %v3902_v57, %v3901_v55 }
 0xa25   : > { %v5245_v11 = vunpack.i.h.bf16 %v5243_v7  ;;  %v5244_v12 = vunpack.i.l.bf16 %v5243_v7  ;;  %2197 = vst.msk [vmem:[#allocation2] sm:$0xff] %vm2196_vm4, %v2173_v8  ;;  %4974 = vmatprep.subr.bf16.mxu0 %v4973_v6  ;;  %4705 = vmatmul.mubr.msk.f32.vlgmr.msra.gmra.mrb[50].mxu1 %vm932_vm2, %v3499_v5 }
 0xa26   : > { %4976 = vmatpush3.bf16.msra.mxu0 %v4973_v6 }
 0xa27   : > { %v5369_v9 = vpop.eup %5368  ;;  %v4985_v14 = vpack.c.bf16 %v5245_v11, %v5244_v12  ;;  %4982 = vmatprep.subr.bf16.mxu0 %v4981_v10 }
 0xa28   : > { %v5371_v17 = vpop.eup %5370  ;;  %v2175_v15 = vpop.permute.xlu1 %2174  ;;  %v3502_v16 = vmul.f32 %v5369_v9, %v6348_v31  ;;  %v3905_v31 = vld [vmem:[#allocation9 + $0x20] sm:$0xff] }
 0xa29   : > { %v3017_v18 = vpop.permute.xlu0 %3016  ;;  %v5373_v33 = vpop.eup %5372  ;;  %2198 = vst.msk [vmem:[#allocation2 + $0x8] sm:$0xff] %vm2196_vm4, %v2175_v15  ;;  %4698 = vmatmul.mubr.msk.f32.vlgmr.msra.gmra.mrb[30].mxu0 %vm932_vm2, %v3497_v13  ;;  %4986 = vmatprep.subr.bf16.mxu1 %v4985_v14  ;;  %v3501_v20 = vmul.f32 %v5371_v17, %v6332_v51  ;;  %v4997_v37 = vpack.c.bf16 %v3906_v58, %v3905_v31 }
 0xa2a   : > { %3041 = vst.msk [vmem:[#allocation2] sm:$0xff] %vm3040_vm5, %v3017_v18  ;;  %4984 = vmatpush3.bf16.msra.mxu0 %v4981_v10  ;;  %4711 = vmatprep.mubr.msk.f32.mxu0 %vm932_vm2, %v3500_v3  ;;  %v3503_v29 = vmul.f32 %v5373_v33, %v6340_v54  ;;  %v3903_v54 = vld [vmem:[#allocation9 + $0x10] sm:$0xff]  ;;  %v4266_v33 = vld [vmem:[%s6484_s4] ss:$0 sm:$0xff] }
 0xa2b   : > { %4988 = vmatpush3.bf16.msra.mxu1 %v4985_v14  ;;  %4718 = vmatprep.mubr.msk.f32.mxu1 %vm932_vm2, %v3502_v16  ;;  %v4993_v46 = vpack.c.bf16 %v3904_v38, %v3903_v54 }
 0xa2c   : > { %v3019_v28 = vpop.permute.xlu1 %3018  ;;  %4990 = vmatprep.subr.bf16.mxu0 %v4989_v47 }
 0xa2d   : > { %v2177_v53 = vpop.permute.xlu0 %2176  ;;  %3042 = vst.msk [vmem:[#allocation2 + $0x8] sm:$0xff] %vm3040_vm5, %v3019_v28  ;;  %4712 = vmatmul.mubr.msk.f32.vlgmr.msra.gmra.mrb[32].mxu0 %vm932_vm2, %v3501_v20 }
 0xa2e   : > { %2199 = vst.msk [vmem:[#allocation2 + $0x10] sm:$0xff] %vm2196_vm4, %v2177_v53  ;;  %4719 = vmatmul.mubr.msk.f32.vlgmr.msra.gmra.mrb[52].mxu1 %vm932_vm2, %v3503_v29  ;;  %4992 = vmatpush3.bf16.msra.mxu0 %v4989_v47 }
 0xa2f   : > { %4994 = vmatprep.subr.bf16.mxu0 %v4993_v46 }
 0xa30   : > { %v2179_v34 = vpop.permute.xlu1 %2178 }
 0xa31   : > { %v3021_v48 = vpop.permute.xlu0 %3020  ;;  %2200 = vst.msk [vmem:[#allocation2 + $0x18] sm:$0xff] %vm2196_vm4, %v2179_v34 }
 0xa32   : > { %3043 = vst.msk [vmem:[#allocation2 + $0x10] sm:$0xff] %vm3040_vm5, %v3021_v48  ;;  %4996 = vmatpush3.bf16.msra.mxu0 %v4993_v46 }
 0xa33   : > { %4998 = vmatprep.subr.bf16.mxu0 %v4997_v37 }
 0xa34   : > { %v3023_v62 = vpop.permute.xlu1 %3022 }
 0xa35   : > { %v2181_v42 = vpop.permute.xlu0 %2180  ;;  %3044 = vst.msk [vmem:[#allocation2 + $0x18] sm:$0xff] %vm3040_vm5, %v3023_v62 }
 0xa36   : > { %2201 = vst.msk [vmem:[#allocation2 + $0x20] sm:$0xff] %vm2196_vm4, %v2181_v42  ;;  %5000 = vmatpush3.bf16.msra.mxu0 %v4997_v37 }
 0xa37   : > { %5002 = vmatprep.subr.bf16.mxu0 %v5001_v63 }
 0xa38   : > { %v2183_v43 = vpop.permute.xlu1 %2182 }
 0xa39   : > { %v3025_v39 = vpop.permute.xlu0 %3024  ;;  %2202 = vst.msk [vmem:[#allocation2 + $0x28] sm:$0xff] %vm2196_vm4, %v2183_v43 }
 0xa3a   : > { %3045 = vst.msk [vmem:[#allocation2 + $0x20] sm:$0xff] %vm3040_vm5, %v3025_v39  ;;  %5004 = vmatpush3.bf16.msra.mxu0 %v5001_v63 }
 0xa3b   : > { %5006 = vmatprep.subr.bf16.mxu0 %v5005_v30 }
 0xa3c   : > { %v3027_v0 = vpop.permute.xlu1 %3026 }
 0xa3d   : > { %v2185_v50 = vpop.permute.xlu0 %2184  ;;  %3046 = vst.msk [vmem:[#allocation2 + $0x28] sm:$0xff] %vm3040_vm5, %v3027_v0 }
 0xa3e   : > { %2203 = vst.msk [vmem:[#allocation2 + $0x30] sm:$0xff] %vm2196_vm4, %v2185_v50  ;;  %5008 = vmatpush3.bf16.msra.mxu0 %v5005_v30 }
 0xa3f   : > { %5010 = vmatprep.subr.bf16.mxu0 %v5009_v36 }
 0xa40   : > { %v2187_v49 = vpop.permute.xlu1 %2186 }
 0xa41   : > { %v3029_v51 = vpop.permute.xlu0 %3028  ;;  %2204 = vst.msk [vmem:[#allocation2 + $0x38] sm:$0xff] %vm2196_vm4, %v2187_v49 }
 0xa42   : > { %3047 = vst.msk [vmem:[#allocation2 + $0x30] sm:$0xff] %vm3040_vm5, %v3029_v51  ;;  %5012 = vmatpush3.bf16.msra.mxu0 %v5009_v36 }
 0xa43   : > { %5014 = vmatprep.subr.bf16.mxu0 %v5013_v22 }
 0xa44   : > { %v3031_v52 = vpop.permute.xlu1 %3030 }
 0xa45   : > { %3048 = vst.msk [vmem:[#allocation2 + $0x38] sm:$0xff] %vm3040_vm5, %v3031_v52 }
 0xa46   : > { %5016 = vmatpush3.bf16.msra.mxu0 %v5013_v22 }
 0xa47   : > { %5018 = vmatprep.subr.bf16.mxu0 %v5017_v56 }
 0xa4a   : > { %5020 = vmatpush3.bf16.msra.mxu0 %v5017_v56 }
 0xaf8   : > { %v4706_v45 = vpop.f32.mrb[50].mxu1 }
 0xaf9   : > { %v3669_v19 = vpop.f32.mrb[51].mxu1 }
 0xafc   : > { %v4699_v23 = vpop.f32.mrb[30].mxu0 }
 0xafd   : > { %3862 = vrot.lane.b32.xlu1 %v4699_v23, %s5578_s6  ;;  %v3582_v27 = vpop.f32.mrb[31].mxu0 }
 0xafe   : > { %3860 = vrot.lane.b32.xlu0 %v3582_v27, %s5578_s6 }
 0xb00   : > { %v4713_v2 = vpop.f32.mrb[32].mxu0 }
 0xb01   : > { %v4720_v4 = vpop.f32.mrb[52].mxu1  ;;  %3866 = vrot.lane.b32.xlu1 %v4706_v45, %s5578_s6  ;;  %v3756_v60 = vpop.f32.mrb[33].mxu0 }
 0xb02   : > { %v3843_v5 = vpop.f32.mrb[53].mxu1  ;;  %3864 = vrot.lane.b32.xlu0 %v3669_v19, %s5578_s6 }
 0xb05   : > { %3870 = vrot.lane.b32.xlu1 %v4713_v2, %s5578_s6 }
 0xb06   : > { %3868 = vrot.lane.b32.xlu0 %v3756_v60, %s5578_s6 }
 0xb09   : > { %3874 = vrot.lane.b32.xlu1 %v4720_v4, %s5578_s6 }
 0xb0a   : > { %3872 = vrot.lane.b32.xlu0 %v3843_v5, %s5578_s6 }
 0xb6f   : > { %v3863_v6 = vpop.permute.xlu1 %3862 }
 0xb70   : > { %3886 = vst.msk [vmem:[#allocation2 + $0x8] sm:$0xff] %vm3884_vm6, %v3863_v6  ;;  %v3861_v1 = vpop.permute.xlu0 %3860 }
 0xb71   : > { %3885 = vst.msk [vmem:[#allocation2] sm:$0xff] %vm3884_vm6, %v3861_v1 }
 0xb73   : > { %v3867_v7 = vpop.permute.xlu1 %3866 }
 0xb74   : > { %3888 = vst.msk [vmem:[#allocation2 + $0x18] sm:$0xff] %vm3884_vm6, %v3867_v7  ;;  %v3865_v8 = vpop.permute.xlu0 %3864 }
 0xb75   : > { %3887 = vst.msk [vmem:[#allocation2 + $0x10] sm:$0xff] %vm3884_vm6, %v3865_v8 }
 0xb77   : > { %v3871_v61 = vpop.permute.xlu1 %3870  ;;  %v3894_v12 = vld [vmem:[#allocation2 + $0x8] sm:$0xff] }
 0xb78   : > { %3890 = vst.msk [vmem:[#allocation2 + $0x28] sm:$0xff] %vm3884_vm6, %v3871_v61  ;;  %v3869_v10 = vpop.permute.xlu0 %3868  ;;  %v3893_v11 = vld [vmem:[#allocation2] sm:$0xff] }
 0xb79   : > { %3889 = vst.msk [vmem:[#allocation2 + $0x20] sm:$0xff] %vm3884_vm6, %v3869_v10  ;;  %4753 = vmatprep.mubr.f32.mxu0 %v3893_v11 }
 0xb7a   : > { %4754 = vmatmul.mubr.f32.vlgmr.msra.gmra.mrb[34].mxu0 %v3894_v12 }
 0xb7b   : > { %v3875_v9 = vpop.permute.xlu1 %3874  ;;  %v3896_v17 = vld [vmem:[#allocation2 + $0x18] sm:$0xff] }
 0xb7c   : > { %3892 = vst.msk [vmem:[#allocation2 + $0x38] sm:$0xff] %vm3884_vm6, %v3875_v9  ;;  %v3873_v13 = vpop.permute.xlu0 %3872  ;;  %v3895_v14 = vld [vmem:[#allocation2 + $0x10] sm:$0xff] }
 0xb7d   : > { %3891 = vst.msk [vmem:[#allocation2 + $0x30] sm:$0xff] %vm3884_vm6, %v3873_v13  ;;  %4756 = vmatprep.mubr.f32.mxu0 %v3895_v14 }
 0xb7e   : > { %4757 = vmatmul.mubr.f32.gmra.mrb[36].mxu0 %v3896_v17 }
 0xb7f   : > { %v3898_v18 = vld [vmem:[#allocation2 + $0x28] sm:$0xff] }
 0xb80   : > { %v3897_v15 = vld [vmem:[#allocation2 + $0x20] sm:$0xff] }
 0xb81   : > { %4759 = vmatprep.mubr.f32.mxu0 %v3897_v15 }
 0xb82   : > { %4760 = vmatmul.mubr.f32.gmra.mrb[38].mxu0 %v3898_v18 }
 0xb83   : > { %v3900_v16 = vld [vmem:[#allocation2 + $0x38] sm:$0xff] }
 0xb84   : > { %v3899_v3 = vld [vmem:[#allocation2 + $0x30] sm:$0xff] }
 0xb85   : > { %4762 = vmatprep.mubr.f32.mxu0 %v3899_v3 }
 0xb86   : > { %4763 = vmatmul.mubr.f32.gmra.mrb[40].mxu0 %v3900_v16 }
 0xc4d   : > { %v4755_v20 = vpop.f32.mrb[34].mxu0 }
 0xc4e   : > { %v3996_v29 = vadd.f32 %v4755_v20, %v4266_v33  ;;  %v3990_v28 = vpop.f32.mrb[35].mxu0 }
 0xc4f   : > { %v3991_v53 = vadd.f32 %v4266_v33, %v3990_v28 }
 0xc50   : > { %4030 = vst [vmem:[%s287_s8 + $0x8] sm:$0xff] %v3996_v29 }
 0xc51   : > { %4029 = vst [vmem:[%s287_s8] sm:$0xff] %v3991_v53  ;;  %v4758_v34 = vpop.f32.mrb[36].mxu0 }
 0xc52   : > { %v4006_v48 = vadd.f32 %v4758_v34, %v4266_v33  ;;  %v4000_v62 = vpop.f32.mrb[37].mxu0 }
 0xc53   : > { %v4001_v42 = vadd.f32 %v4266_v33, %v4000_v62 }
 0xc54   : > { %4032 = vst [vmem:[%s287_s8 + $0x18] sm:$0xff] %v4006_v48 }
 0xc55   : > { %4031 = vst [vmem:[%s287_s8 + $0x10] sm:$0xff] %v4001_v42  ;;  %v4761_v43 = vpop.f32.mrb[38].mxu0 }
 0xc56   : > { %v4016_v39 = vadd.f32 %v4761_v43, %v4266_v33  ;;  %v4010_v0 = vpop.f32.mrb[39].mxu0 }
 0xc57   : > { %v4011_v50 = vadd.f32 %v4266_v33, %v4010_v0 }
 0xc58   : > { %4034 = vst [vmem:[%s287_s8 + $0x28] sm:$0xff] %v4016_v39 }
 0xc59   : > { %4033 = vst [vmem:[%s287_s8 + $0x20] sm:$0xff] %v4011_v50  ;;  %v4764_v49 = vpop.f32.mrb[40].mxu0 }
 0xc5a   : > { %v4026_v51 = vadd.f32 %v4764_v49, %v4266_v33  ;;  %v4020_v52 = vpop.f32.mrb[41].mxu0 }
 0xc5b   : > { %v4021_v55 = vadd.f32 %v4266_v33, %v4020_v52 }
 0xc5c   : > { %4036 = vst [vmem:[%s287_s8 + $0x38] sm:$0xff] %v4026_v51 }
 0xc5d   : > { %4035 = vst [vmem:[%s287_s8 + $0x30] sm:$0xff] %v4021_v55 }
 0xc5e   : > { %5501 = shalt.err (!%p5498_p4)
}
 0xc5f   : > { %s5502_s27 = scalar_lea.hbm %s6435_s11, 1024  ;;  %s5506_s13 = scalar_lea.hbm %s6485_s5, 2048 }
 0xc60   : > { %p5503_p9 = scmp.ne.s32.totalorder %s6435_s11, %s5502_s27  ;;  %p5507_p8 = scmp.lt.u32.totalorder %s6435_s11, %s6485_s5 }
 0xc61   : > { %p5508_p13 = scmp.lt.u32.totalorder %s5506_s13, %s5502_s27  ;;  %p5510_p10 = scmp.lt.u32.totalorder %s5502_s27, %s6435_s11 }
 0xc62   : > { %p5504_p0 = pnand %p5503_p9, %p5759_p5 }
 0xc63   : > { %p5509_p6 = por %p5508_p13, %p5507_p8 }
 0xc64   : > { %p5505_p11 = pneg %p5504_p0 }
 0xc65   : > { %p5511_p3 = por %p5510_p10, %p5509_p6 }
 0xc67   : > { %p5512_p7 = pnand %p5511_p3, %p5505_p11 }
 0xc69   : > { %5515 = shalt.err (!%p5512_p7)
}
 0xc6a   : > { %s5580_s9 = smov 128  }
 0xc6b   : > { %5051 = dma.vmem_to_hbm [thread:$0]  (%p5759_p5), %s6430_s28, 1024, %s6435_s11, %s4038_s16, %s5580_s9, %s5580_s9, %s5576_s15  }
 0xc6c PF: > { %s4067_s10 = sand.u32 1, %s5550_s18   ;;  %p6505_p12 = scmp.ne.s32.totalorder %s6490_s25, 0 }
 0xc6d   : > { %p6506_p2 = scmp.ge.s32.totalorder %s5562_s21, 2  ;;  %s4068_s24 = scalar_lea.sflag [#allocation5], %s4067_s10 }
 0xc6f   : > { %p5068_p1 = pnand %p6506_p2, %p6505_p12 }
 0xc71   : > { %5545 = dma.done.wait (!%p5068_p1), %s4068_s24, 1024  }
 0xc72   : > { %5547 = vsyncadd (!%p5068_p1), %s4068_s24, 4294966272  ;;  %p20_p4 = scmp.ge.s32.totalorder %s5724_s30, 4   ;;  %s6507_s18 = smov %s5554_s19 }
 0xc73   : > { %s6508_s19 = smov %s5558_s20  ;;  %s6509_s20 = smov %s5755_s23 }
 0xc74   : > { %s6510_s21 = smov %s5724_s30  ;;  %22 = sbr.rel (!%p20_p4) target bundleno = 7 (0x7), region = 100 }
 0xc7b   :  { %4073 = vsyncpa [#allocation4], 1 }
 0xc7c   :  { %4075 = vsyncpa [#allocation4 + $0x1], 1 }
 0xc7d   :  { %4076 = vsyncpa [#allocation7], 1 }
 0xc7e   :  { %4077 = vsyncpa [#allocation10], 1 }
 0xc7f   :  { %4078 = vsyncpa [#allocation5], 1 }
 0xc80   :  { %4080 = vsyncpa [#allocation5 + $0x1], 1 }

</bundles_post_ra>
